<compile_context>
chip_gen: v7x
topology: tpu7x:2x2x1
jax: 0.10.0
libtpu: 0.0.40
codegen_flags: <defaults>
</compile_context>

<pallas_src>
import functools
import math

import jax
import jax.numpy as jnp
from jax.experimental import pallas as pl
from jax.experimental.pallas import tpu as pltpu

# Whole-array-in-VMEM spec (used only for the tiny classifier head).
VMEM_SPEC = pl.BlockSpec(memory_space=pltpu.MemorySpace.VMEM)

# Tile-size candidates (largest that divides the dim wins, else full extent).
_TM_CANDIDATES = (512, 256, 128, 8)
_TN_CANDIDATES = (1152, 768, 512, 256, 128)
_TK_CANDIDATES = (768, 512, 256, 128)


def _generation_vmem_limit():
    """96 MiB on 128-MiB-VMEM chips (v5e/v6e), <=48 MiB on v7x, else 32 MiB."""
    default = 32 * 1024 * 1024
    try:
        info_fn = getattr(pltpu, "get_tpu_info", None)
        if info_fn is None:
            return default
        cap = getattr(info_fn(), "vmem_capacity_bytes", None)
        if not cap:
            return default
        if cap >= 100 * 1024 * 1024:          # v5e / v6e: 128 MiB physical
            return 96 * 1024 * 1024
        return min(48 * 1024 * 1024, int(cap * 3 // 4))   # v7x: 64 MiB per TC
    except Exception:
        return default


_VMEM_LIMIT = _generation_vmem_limit()


def _pick_tile(dim, candidates):
    for c in candidates:
        if dim % c == 0:
            return c
    return dim  # fall back to the full (un-tiled) extent


def _apply_act(y, act):
    if act == "gelu":
        # tanh-approx GELU (transcendental stays on the EUP slot).
        c = math.sqrt(2.0 / math.pi)
        return 0.5 * y * (1.0 + jnp.tanh(c * (y + 0.044715 * y * y * y)))
    if act == "tanh":
        return jnp.tanh(y)
    if act == "relu":
        return jnp.maximum(y, 0.0)
    return y


# ----------------------------- linear kernels ------------------------------

def _matmul_kernel(x_ref, w_ref, b_ref, o_ref, acc_ref, *, act):
    """Tiled x @ W + b with reduction carried over grid axis 2."""
    @pl.when(pl.program_id(2) == 0)
    def _init():
        acc_ref[...] = jnp.zeros_like(acc_ref)

    acc_ref[...] += jnp.dot(x_ref[...].astype(jnp.bfloat16), w_ref[...],
                            preferred_element_type=jnp.float32)

    @pl.when(pl.program_id(2) == pl.num_programs(2) - 1)
    def _finalize():
        o_ref[...] = _apply_act(acc_ref[...] + b_ref[...], act).astype(o_ref.dtype)


def _matmul_1k_kernel(x_ref, w_ref, b_ref, o_ref, *, act):
    """x @ W + b with the whole K dim in one block (no accumulator carry)."""
    y = jnp.dot(x_ref[...].astype(jnp.bfloat16), w_ref[...],
                preferred_element_type=jnp.float32) + b_ref[...]
    o_ref[...] = _apply_act(y, act).astype(o_ref.dtype)


def pallas_linear(x, w_t, b, act="none", out_dtype=jnp.float32):
    """x: (M, K) bf16/f32, w_t: (K, N) bf16 pre-transposed, b: (N,) f32 -> (M, N)."""
    M, K = x.shape
    N = w_t.shape[1]
    tk = _pick_tile(K, _TK_CANDIDATES)

    budget = int(0.6 * _VMEM_LIMIT)
    x_bytes = x.dtype.itemsize
    w_bytes = w_t.dtype.itemsize
    out_bytes = jnp.dtype(out_dtype).itemsize

    def working_set(tm_, tn_):
        acc = tm_ * tn_ * 4 if tk < K else 0
        return (2 * tm_ * tk * x_bytes + 2 * tk * tn_ * w_bytes
                + acc + 2 * tm_ * tn_ * out_bytes)

    tm_opts = [c for c in _TM_CANDIDATES if M % c == 0] or [M]
    tn_opts = [c for c in _TN_CANDIDATES if N % c == 0] or [N]
    tm, tn = tm_opts[-1], tn_opts[-1]
    done = False
    for tm_c in tm_opts:
        for tn_c in tn_opts:
            if working_set(tm_c, tn_c) <= budget:
                tm, tn, done = tm_c, tn_c, True
                break
        if done:
            break

    b2 = b.reshape(1, N)
    if tk == K:
        return pl.pallas_call(
            functools.partial(_matmul_1k_kernel, act=act),
            out_shape=jax.ShapeDtypeStruct((M, N), out_dtype),
            grid_spec=pltpu.PrefetchScalarGridSpec(
                num_scalar_prefetch=0,
                grid=(M // tm, N // tn),
                in_specs=[
                    pl.BlockSpec((tm, K), lambda i, j: (i, 0)),
                    pl.BlockSpec((K, tn), lambda i, j: (0, j)),
                    pl.BlockSpec((1, tn), lambda i, j: (0, j)),
                ],
                out_specs=pl.BlockSpec((tm, tn), lambda i, j: (i, j))),
            compiler_params=pltpu.CompilerParams(
                dimension_semantics=("parallel", "parallel"),
                vmem_limit_bytes=_VMEM_LIMIT),
        )(x, w_t, b2)

    return pl.pallas_call(
        functools.partial(_matmul_kernel, act=act),
        out_shape=jax.ShapeDtypeStruct((M, N), out_dtype),
        grid_spec=pltpu.PrefetchScalarGridSpec(
            num_scalar_prefetch=0,
            grid=(M // tm, N // tn, K // tk),
            in_specs=[
                pl.BlockSpec((tm, tk), lambda i, j, k: (i, k)),
                pl.BlockSpec((tk, tn), lambda i, j, k: (k, j)),
                pl.BlockSpec((1, tn), lambda i, j, k: (0, j)),
            ],
            out_specs=pl.BlockSpec((tm, tn), lambda i, j, k: (i, j)),
            scratch_shapes=[pltpu.VMEM((tm, tn), jnp.float32)]),
        compiler_params=pltpu.CompilerParams(
            dimension_semantics=("parallel", "parallel", "arbitrary"),
            vmem_limit_bytes=_VMEM_LIMIT),
    )(x, w_t, b2)


# ---------------- linear + residual + LayerNorm (fused epilogue) -----------

def _ln_finish(y, g, beta, eps):
    mu = jnp.mean(y, axis=-1, keepdims=True)
    var = jnp.mean(jnp.square(y - mu), axis=-1, keepdims=True)
    return (y - mu) * jax.lax.rsqrt(var + eps) * g + beta


def _matmul_res_ln_kernel(x_ref, w_ref, b_ref, r_ref, g_ref, beta_ref,
                          of_ref, ob_ref, acc_ref, *, eps):
    @pl.when(pl.program_id(1) == 0)
    def _init():
        acc_ref[...] = jnp.zeros_like(acc_ref)

    acc_ref[...] += jnp.dot(x_ref[...].astype(jnp.bfloat16), w_ref[...],
                            preferred_element_type=jnp.float32)

    @pl.when(pl.program_id(1) == pl.num_programs(1) - 1)
    def _finalize():
        y = _ln_finish(acc_ref[...] + b_ref[...] + r_ref[...],
                       g_ref[...], beta_ref[...], eps)
        of_ref[...] = y
        ob_ref[...] = y.astype(jnp.bfloat16)


def _matmul_res_ln_1k_kernel(x_ref, w_ref, b_ref, r_ref, g_ref, beta_ref,
                             of_ref, ob_ref, *, eps):
    y = (jnp.dot(x_ref[...].astype(jnp.bfloat16), w_ref[...],
                 preferred_element_type=jnp.float32)
         + b_ref[...] + r_ref[...])
    y = _ln_finish(y, g_ref[...], beta_ref[...], eps)
    of_ref[...] = y
    ob_ref[...] = y.astype(jnp.bfloat16)


def pallas_linear_residual_ln(x, w_t, b, residual, gamma, beta, eps=1e-12):
    """LayerNorm(x @ W + b + residual) -> (f32 residual stream, bf16 copy)."""
    M, K = x.shape
    H = w_t.shape[1]
    tk = _pick_tile(K, _TK_CANDIDATES)

    budget = int(0.6 * _VMEM_LIMIT)
    x_bytes = x.dtype.itemsize

    def working_set(tm_):
        acc = tm_ * H * 4 if tk < K else 0
        return (2 * tm_ * tk * x_bytes + 2 * tk * H * w_t.dtype.itemsize
                + acc
                + 2 * tm_ * H * 4            # residual (f32)
                + 2 * tm_ * H * 4            # f32 output
                + 2 * tm_ * H * 2)           # bf16 output

    tm_opts = [c for c in _TM_CANDIDATES if M % c == 0] or [M]
    tm = tm_opts[-1]
    for c in tm_opts:
        if working_set(c) <= budget:
            tm = c
            break

    args = (x, w_t, b.reshape(1, H), residual,
            gamma.reshape(1, H), beta.reshape(1, H))
    out_shape = (jax.ShapeDtypeStruct((M, H), jnp.float32),
                 jax.ShapeDtypeStruct((M, H), jnp.bfloat16))

    if tk == K:
        return pl.pallas_call(
            functools.partial(_matmul_res_ln_1k_kernel, eps=eps),
            out_shape=out_shape,
            grid_spec=pltpu.PrefetchScalarGridSpec(
                num_scalar_prefetch=0,
                grid=(M // tm,),
                in_specs=[
                    pl.BlockSpec((tm, K), lambda i: (i, 0)),
                    pl.BlockSpec((K, H), lambda i: (0, 0)),
                    pl.BlockSpec((1, H), lambda i: (0, 0)),
                    pl.BlockSpec((tm, H), lambda i: (i, 0)),
                    pl.BlockSpec((1, H), lambda i: (0, 0)),
                    pl.BlockSpec((1, H), lambda i: (0, 0)),
                ],
                out_specs=[pl.BlockSpec((tm, H), lambda i: (i, 0)),
                           pl.BlockSpec((tm, H), lambda i: (i, 0))]),
            compiler_params=pltpu.CompilerParams(
                dimension_semantics=("parallel",),
                vmem_limit_bytes=_VMEM_LIMIT),
        )(*args)

    return pl.pallas_call(
        functools.partial(_matmul_res_ln_kernel, eps=eps),
        out_shape=out_shape,
        grid_spec=pltpu.PrefetchScalarGridSpec(
            num_scalar_prefetch=0,
            grid=(M // tm, K // tk),
            in_specs=[
                pl.BlockSpec((tm, tk), lambda i, k: (i, k)),
                pl.BlockSpec((tk, H), lambda i, k: (k, 0)),
                pl.BlockSpec((1, H), lambda i, k: (0, 0)),
                pl.BlockSpec((tm, H), lambda i, k: (i, 0)),
                pl.BlockSpec((1, H), lambda i, k: (0, 0)),
                pl.BlockSpec((1, H), lambda i, k: (0, 0)),
            ],
            out_specs=[pl.BlockSpec((tm, H), lambda i, k: (i, 0)),
                       pl.BlockSpec((tm, H), lambda i, k: (i, 0))],
            scratch_shapes=[pltpu.VMEM((tm, H), jnp.float32)]),
        compiler_params=pltpu.CompilerParams(
            dimension_semantics=("parallel", "arbitrary"),
            vmem_limit_bytes=_VMEM_LIMIT),
    )(*args)


# ------------------- fused embedding add + LayerNorm -----------------------

def _embed_ln_kernel(w_ref, p_ref, t_ref, g_ref, b_ref, of_ref, ob_ref, *, eps):
    x = w_ref[0] + p_ref[...] + t_ref[...]
    y = _ln_finish(x, g_ref[...], b_ref[...], eps)
    of_ref[0] = y
    ob_ref[0] = y.astype(jnp.bfloat16)


def pallas_embed_ln(word, pos, tok, gamma, beta, eps=1e-12):
    """word: (B,S,H) f32 gathered embeddings; pos: (S,H); tok: (1,H)."""
    B, S, H = word.shape
    ts = _pick_tile(S, _TM_CANDIDATES)
    return pl.pallas_call(
        functools.partial(_embed_ln_kernel, eps=eps),
        out_shape=(jax.ShapeDtypeStruct((B, S, H), jnp.float32),
                   jax.ShapeDtypeStruct((B, S, H), jnp.bfloat16)),
        grid_spec=pltpu.PrefetchScalarGridSpec(
            num_scalar_prefetch=0,
            grid=(B, S // ts),
            in_specs=[
                pl.BlockSpec((1, ts, H), lambda b, s: (b, s, 0)),
                pl.BlockSpec((ts, H), lambda b, s: (s, 0)),
                pl.BlockSpec((1, H), lambda b, s: (0, 0)),
                pl.BlockSpec((1, H), lambda b, s: (0, 0)),
                pl.BlockSpec((1, H), lambda b, s: (0, 0)),
            ],
            out_specs=[pl.BlockSpec((1, ts, H), lambda b, s: (b, s, 0)),
                       pl.BlockSpec((1, ts, H), lambda b, s: (b, s, 0))]),
        compiler_params=pltpu.CompilerParams(
            dimension_semantics=("parallel", "parallel"),
            vmem_limit_bytes=_VMEM_LIMIT),
    )(word, pos, tok, gamma.reshape(1, H), beta.reshape(1, H))


# ------------------------------ attention -----------------------------------

def _mha_core(q, k, v, mask, n_heads, dh):
    """Per-head attention over lane-packed head blocks; 1/sqrt(dh) already in Wq."""
    outs = []
    for h in range(n_heads):
        sl = slice(h * dh, (h + 1) * dh)
        qi, ki, vi = q[:, sl], k[:, sl], v[:, sl]
        s = jax.lax.dot_general(qi, ki, (((1,), (1,)), ((), ())),
                                preferred_element_type=jnp.float32) + mask
        s = s - jnp.max(s, axis=-1, keepdims=True)
        p = jnp.exp(s)
        p = p * pl.reciprocal(jnp.sum(p, axis=-1, keepdims=True), approx=True)
        outs.append(jnp.dot(p.astype(vi.dtype), vi,
                            preferred_element_type=jnp.float32))
    return outs[0] if len(outs) == 1 else jnp.concatenate(outs, axis=-1)


def _attn_grouped_kernel(q_ref, k_ref, v_ref, m_ref, o_ref, *, hp, dh):
    ctx = _mha_core(q_ref[0], k_ref[0], v_ref[0], m_ref[0], hp, dh)
    o_ref[0] = ctx.astype(o_ref.dtype)


def _attn_full_kernel(qkv_ref, m_ref, o_ref, *, nH, dh):
    H = nH * dh
    blk = qkv_ref[0]                       # (S, 3H)
    ctx = _mha_core(blk[:, :H], blk[:, H:2 * H], blk[:, 2 * H:],
                    m_ref[0], nH, dh)
    o_ref[0] = ctx.astype(o_ref.dtype)


def _pick_heads_per_block(nH, dh):
    for hp in (8, 4, 2):
        if nH % hp == 0 and (hp * dh) % 128 == 0 and hp * dh <= 256:
            return hp
    if dh % 128 == 0:
        return 1
    return None


def _qkv_group_spec(S, w, base):
    return pl.BlockSpec((1, S, w), lambda b, g: (b, 0, base + g))


def pallas_attention(qkv, mask_add, *, nH, dh):
    """qkv: (B, S, 3H) bf16 (no XLA transpose); mask_add: (B, 1, S) f32 additive.

    Returns ctx: (B, S, H) bf16 written head-group-wise via BlockSpec index_maps.
    """
    B, S, threeH = qkv.shape
    H = nH * dh
    hp = _pick_heads_per_block(nH, dh)

    if hp is not None:
        nG = nH // hp
        w = hp * dh
        return pl.pallas_call(
            functools.partial(_attn_grouped_kernel, hp=hp, dh=dh),
            out_shape=jax.ShapeDtypeStruct((B, S, H), jnp.bfloat16),
            grid=(B, nG),
            in_specs=[
                _qkv_group_spec(S, w, 0),            # Q head group
                _qkv_group_spec(S, w, nG),           # K head group
                _qkv_group_spec(S, w, 2 * nG),       # V head group
                pl.BlockSpec((1, 1, S), lambda b, g: (b, 0, 0)),
            ],
            out_specs=pl.BlockSpec((1, S, w), lambda b, g: (b, 0, g)),
            compiler_params=pltpu.CompilerParams(
                dimension_semantics=("parallel", "parallel"),
                vmem_limit_bytes=_VMEM_LIMIT),
        )(qkv, qkv, qkv, mask_add)

    # Fallback (small / odd head dims): whole (S, 3H) block per batch element.
    return pl.pallas_call(
        functools.partial(_attn_full_kernel, nH=nH, dh=dh),
        out_shape=jax.ShapeDtypeStruct((B, S, H), jnp.bfloat16),
        grid=(B,),
        in_specs=[
            pl.BlockSpec((1, S, threeH), lambda b: (b, 0, 0)),
            pl.BlockSpec((1, 1, S), lambda b: (b, 0, 0)),
        ],
        out_specs=pl.BlockSpec((1, S, H), lambda b: (b, 0, 0)),
        compiler_params=pltpu.CompilerParams(
            dimension_semantics=("parallel",),
            vmem_limit_bytes=_VMEM_LIMIT),
    )(qkv, mask_add)


# ------------------------------ classifier head -----------------------------

def _classifier_kernel(x_ref, w1_ref, b1_ref, w2_ref, b2_ref, w3_ref, b3_ref,
                       o_ref):
    # Linear(+folded BN) -> ReLU -> [Dropout=id] ->
    # Linear(+folded BN) -> ReLU -> [Dropout=id] -> Linear.   All f32 (tiny).
    h = jnp.dot(x_ref[...], w1_ref[...],
                preferred_element_type=jnp.float32) + b1_ref[...]
    h = jnp.maximum(h, 0.0)
    h = jnp.dot(h, w2_ref[...],
                preferred_element_type=jnp.float32) + b2_ref[...]
    h = jnp.maximum(h, 0.0)
    o_ref[...] = jnp.dot(h, w3_ref[...],
                         preferred_element_type=jnp.float32) + b3_ref[...]


def pallas_classifier(x, p):
    B = x.shape[0]
    n_cls = p["c3_w_t"].shape[1]
    args = [x,
            p["c1_w_t"], p["c1_b"].reshape(1, -1),
            p["c2_w_t"], p["c2_b"].reshape(1, -1),
            p["c3_w_t"], p["c3_b"].reshape(1, -1)]
    return pl.pallas_call(
        _classifier_kernel,
        out_shape=jax.ShapeDtypeStruct((B, n_cls), jnp.float32),
        in_specs=[VMEM_SPEC] * len(args),
        out_specs=VMEM_SPEC,
    )(*args)


# ------------------------------ parameters ---------------------------------

def init_params(key, *, vocab, max_pos, type_vocab, H, L, I, n_classes=3):
    keys = iter(jax.random.split(key, 256))

    def nrm(shape, std=0.02):
        return std * jax.random.normal(next(keys), shape, jnp.float32)

    def xavier(out_f, in_f):  # nn.init.xavier_normal_
        std = math.sqrt(2.0 / (in_f + out_f))
        return std * jax.random.normal(next(keys), (out_f, in_f), jnp.float32)

    ones = lambda n: jnp.ones((n,), jnp.float32)
    zeros = lambda n: jnp.zeros((n,), jnp.float32)

    p = {
        "word_emb": nrm((vocab, H)),
        "pos_emb": nrm((max_pos, H)),
        "type_emb": nrm((type_vocab, H)),
        "emb_ln_g": ones(H), "emb_ln_b": zeros(H),
        "layers": [],
        "pool_w": nrm((H, H)), "pool_b": zeros(H),
    }
    for _ in range(L):
        p["layers"].append(dict(
            q_w=nrm((H, H)), q_b=zeros(H),
            k_w=nrm((H, H)), k_b=zeros(H),
            v_w=nrm((H, H)), v_b=zeros(H),
            o_w=nrm((H, H)), o_b=zeros(H),
            ln1_g=ones(H), ln1_b=zeros(H),
            i_w=nrm((I, H)), i_b=zeros(I),
            f_w=nrm((H, I)), f_b=zeros(H),
            ln2_g=ones(H), ln2_b=zeros(H),
        ))
    H2 = H // 2
    p.update(
        c1_w=xavier(H, H), c1_b=zeros(H),
        bn1_g=ones(H), bn1_b=zeros(H), bn1_m=zeros(H), bn1_v=ones(H),
        c2_w=xavier(H2, H), c2_b=zeros(H2),
        bn2_g=ones(H2), bn2_b=zeros(H2), bn2_m=zeros(H2), bn2_v=ones(H2),
        c3_w=xavier(n_classes, H2), c3_b=zeros(n_classes),
    )
    return p


def _fold_bn(w_t, b, g, beta, m, v, eps=1e-5):
    # Eval-mode BatchNorm1d folded into the preceding Linear (per out feature).
    scale = g * jax.lax.rsqrt(v + eps)
    return w_t * scale[None, :], (b - m) * scale + beta


def prepare_inference_params(p, *, nH):
    """Host-side prep: pre-transpose to (in, out), cast encoder MXU weights to
    bf16, fuse Q/K/V (scale folded into Q), fold eval-mode BN into the head
    (kept f32 for precision)."""
    bf = lambda a: a.astype(jnp.bfloat16)
    H = p["word_emb"].shape[1]
    scale = 1.0 / math.sqrt(H // nH)
    out = {
        "word_emb": p["word_emb"], "pos_emb": p["pos_emb"],
        "type_emb": p["type_emb"],
        "emb_ln_g": p["emb_ln_g"], "emb_ln_b": p["emb_ln_b"],
        "pool_w_t": bf(p["pool_w"].T), "pool_b": p["pool_b"],
        "layers": [],
    }
    for lp in p["layers"]:
        qkv_w_t = jnp.concatenate(
            [lp["q_w"].T * scale, lp["k_w"].T, lp["v_w"].T], axis=1)  # (H, 3H)
        qkv_b = jnp.concatenate([lp["q_b"] * scale, lp["k_b"], lp["v_b"]])
        out["layers"].append(dict(
            qkv_w_t=bf(qkv_w_t), qkv_b=qkv_b,
            o_w_t=bf(lp["o_w"].T), o_b=lp["o_b"],
            ln1_g=lp["ln1_g"], ln1_b=lp["ln1_b"],
            i_w_t=bf(lp["i_w"].T), i_b=lp["i_b"],
            f_w_t=bf(lp["f_w"].T), f_b=lp["f_b"],
            ln2_g=lp["ln2_g"], ln2_b=lp["ln2_b"],
        ))
    c1_w_t, c1_b = _fold_bn(p["c1_w"].T, p["c1_b"], p["bn1_g"], p["bn1_b"],
                            p["bn1_m"], p["bn1_v"])
    c2_w_t, c2_b = _fold_bn(p["c2_w"].T, p["c2_b"], p["bn2_g"], p["bn2_b"],
                            p["bn2_m"], p["bn2_v"])
    out.update(
        c1_w_t=c1_w_t, c1_b=c1_b,     # f32 (BN fold can amplify magnitudes)
        c2_w_t=c2_w_t, c2_b=c2_b,
        c3_w_t=p["c3_w"].T, c3_b=p["c3_b"],
    )
    return out


# ------------------------------ forward pass --------------------------------

def bert_review_classifier_forward(params, input_ids, attention_mask, *, nH):
    B, S = input_ids.shape
    H = params["word_emb"].shape[1]
    dh = H // nH

    # Embedding gather stays as plain-JAX glue; add + LayerNorm fused in Pallas.
    word = jnp.take(params["word_emb"], input_ids, axis=0)          # (B,S,H)
    pos = params["pos_emb"][:S]                                     # (S,H)
    tok = params["type_emb"][0:1]                                   # type ids = 0
    h_f32, h_bf16 = pallas_embed_ln(word, pos, tok,
                                    params["emb_ln_g"], params["emb_ln_b"])
    h_f32 = h_f32.reshape(B * S, H)
    h_bf16 = h_bf16.reshape(B * S, H)

    mask_add = ((1.0 - attention_mask.astype(jnp.float32)) * -10000.0
                ).reshape(B, 1, S)

    for lp in params["layers"]:
        # Fused Q/K/V projection: one (H, 3H) matmul, bf16 activations in & out.
        qkv = pallas_linear(h_bf16, lp["qkv_w_t"], lp["qkv_b"],
                            out_dtype=jnp.bfloat16)                 # (B*S, 3H)
        # Transpose-free attention: head groups read straight from (B, S, 3H).
        ctx = pallas_attention(qkv.reshape(B, S, 3 * H), mask_add,
                               nH=nH, dh=dh)                        # (B,S,H) bf16
        # Output projection + residual + LayerNorm (fused, dual f32/bf16 out).
        h_f32, h_bf16 = pallas_linear_residual_ln(
            ctx.reshape(B * S, H), lp["o_w_t"], lp["o_b"],
            h_f32, lp["ln1_g"], lp["ln1_b"])
        # FFN: up-projection + GELU (fused), down-proj + residual + LN (fused).
        ffn = pallas_linear(h_bf16, lp["i_w_t"], lp["i_b"], act="gelu",
                            out_dtype=jnp.bfloat16)                 # (B*S, I)
        h_f32, h_bf16 = pallas_linear_residual_ln(
            ffn, lp["f_w_t"], lp["f_b"], h_f32, lp["ln2_g"], lp["ln2_b"])

    # BERT pooler: tanh(W_p h[:, 0] + b_p)
    cls = h_bf16.reshape(B, S, H)[:, 0, :]
    pooled = pallas_linear(cls, params["pool_w_t"], params["pool_b"],
                           act="tanh")

    # Classifier head (BN folded, Dropout = identity) -> (B, 3)
    return pallas_classifier(pooled, params)


# --------------------------------- main -------------------------------------

if __name__ == "__main__":
    key = jax.random.PRNGKey(0)
    pkey, ikey = jax.random.split(key)

    VOCAB, MAX_POS, TYPE_VOCAB = 50, 16, 2
    H, nH, L, INTER = 32, 2, 2, 64
    B, S = 2, 8

    raw = init_params(pkey, vocab=VOCAB, max_pos=MAX_POS,
                      type_vocab=TYPE_VOCAB, H=H, L=L, I=INTER)
    params = prepare_inference_params(raw, nH=nH)

    input_ids = jax.random.randint(ikey, (B, S), 0, VOCAB, dtype=jnp.int32)
    attention_mask = jnp.ones((B, S), dtype=jnp.int32).at[1, 6:].set(0)

    fwd = jax.jit(functools.partial(bert_review_classifier_forward, nH=nH))
    logits = fwd(params, input_ids, attention_mask)
    logits = jax.block_until_ready(logits)
    assert logits.shape == (B, 3) and logits.dtype == jnp.float32
    assert bool(jnp.all(jnp.isfinite(logits)))
    print("KERNEL_OK")
</pallas_src>

<mosaic_0001>
module attributes {stable_mosaic.version = 11 : i64} {
  func.func @_embed_ln_kernel(%arg0: i32, %arg1: i32, %arg2: memref<1x8x32xf32, #tpu.memory_space<vmem>>, %arg3: memref<8x32xf32, #tpu.memory_space<vmem>>, %arg4: memref<1x32xf32, #tpu.memory_space<vmem>>, %arg5: memref<1x32xf32, #tpu.memory_space<vmem>>, %arg6: memref<1x32xf32, #tpu.memory_space<vmem>>, %arg7: memref<1x8x32xf32, #tpu.memory_space<vmem>>, %arg8: memref<1x8x32xbf16, #tpu.memory_space<vmem>>) attributes {dimension_semantics = [#tpu.dimension_semantics<parallel>, #tpu.dimension_semantics<parallel>], iteration_bounds = array<i64: 2, 1>, scalar_prefetch = 0 : i64, scratch_operands = 0 : i64, tpu.core_type = #tpu.core_type<tc>, window_params = [{transform_indices = @transform_0, window_bounds = array<i64: 1, 8, 32>}, {transform_indices = @transform_1, window_bounds = array<i64: 8, 32>}, {pipeline_mode = #tpu.pipeline_mode<synchronous>, transform_indices = @transform_2, window_bounds = array<i64: 1, 32>}, {pipeline_mode = #tpu.pipeline_mode<synchronous>, transform_indices = @transform_3, window_bounds = array<i64: 1, 32>}, {pipeline_mode = #tpu.pipeline_mode<synchronous>, transform_indices = @transform_4, window_bounds = array<i64: 1, 32>}, {transform_indices = @transform_5, window_bounds = array<i64: 1, 8, 32>}, {transform_indices = @transform_6, window_bounds = array<i64: 1, 8, 32>}]} {
    %c0 = arith.constant 0 : index
    %c0_0 = arith.constant 0 : index
    %c0_1 = arith.constant 0 : index
    %0 = vector.load %arg2[%c0, %c0_0, %c0_1] : memref<1x8x32xf32, #tpu.memory_space<vmem>>, vector<1x8x32xf32>
    %1 = vector.shape_cast %0 : vector<1x8x32xf32> to vector<8x32xf32>
    %c0_2 = arith.constant 0 : index
    %c0_3 = arith.constant 0 : index
    %2 = vector.load %arg3[%c0_2, %c0_3] : memref<8x32xf32, #tpu.memory_space<vmem>>, vector<8x32xf32>
    %3 = arith.addf %1, %2 : vector<8x32xf32>
    %c0_4 = arith.constant 0 : index
    %c0_5 = arith.constant 0 : index
    %4 = vector.load %arg4[%c0_4, %c0_5] : memref<1x32xf32, #tpu.memory_space<vmem>>, vector<1x32xf32>
    %5 = vector.broadcast %4 : vector<1x32xf32> to vector<8x32xf32>
    %6 = arith.addf %3, %5 : vector<8x32xf32>
    %c0_6 = arith.constant 0 : index
    %c0_7 = arith.constant 0 : index
    %7 = vector.load %arg5[%c0_6, %c0_7] : memref<1x32xf32, #tpu.memory_space<vmem>>, vector<1x32xf32>
    %c0_8 = arith.constant 0 : index
    %c0_9 = arith.constant 0 : index
    %8 = vector.load %arg6[%c0_8, %c0_9] : memref<1x32xf32, #tpu.memory_space<vmem>>, vector<1x32xf32>
    %cst = arith.constant dense<0.000000e+00> : vector<8xf32>
    %9 = vector.multi_reduction <add>, %6, %cst [1] : vector<8x32xf32> to vector<8xf32>
    %10 = vector.shape_cast %9 : vector<8xf32> to vector<8x1xf32>
    %cst_10 = arith.constant 3.200000e+01 : f32
    %11 = vector.broadcast %cst_10 : f32 to vector<8x1xf32>
    %12 = arith.divf %10, %11 : vector<8x1xf32>
    %13 = vector.broadcast %12 : vector<8x1xf32> to vector<8x32xf32>
    %14 = arith.subf %6, %13 : vector<8x32xf32>
    %15 = arith.mulf %14, %14 : vector<8x32xf32>
    %cst_11 = arith.constant dense<0.000000e+00> : vector<8xf32>
    %16 = vector.multi_reduction <add>, %15, %cst_11 [1] : vector<8x32xf32> to vector<8xf32>
    %17 = vector.shape_cast %16 : vector<8xf32> to vector<8x1xf32>
    %cst_12 = arith.constant 3.200000e+01 : f32
    %18 = vector.broadcast %cst_12 : f32 to vector<8x1xf32>
    %19 = arith.divf %17, %18 : vector<8x1xf32>
    %20 = vector.broadcast %12 : vector<8x1xf32> to vector<8x32xf32>
    %21 = arith.subf %6, %20 : vector<8x32xf32>
    %cst_13 = arith.constant 9.99999996E-13 : f32
    %22 = vector.broadcast %cst_13 : f32 to vector<8x1xf32>
    %23 = arith.addf %19, %22 : vector<8x1xf32>
    %24 = math.rsqrt %23 : vector<8x1xf32>
    %25 = vector.broadcast %24 : vector<8x1xf32> to vector<8x32xf32>
    %26 = arith.mulf %21, %25 : vector<8x32xf32>
    %27 = vector.broadcast %7 : vector<1x32xf32> to vector<8x32xf32>
    %28 = arith.mulf %26, %27 : vector<8x32xf32>
    %29 = vector.broadcast %8 : vector<1x32xf32> to vector<8x32xf32>
    %30 = arith.addf %28, %29 : vector<8x32xf32>
    %c0_14 = arith.constant 0 : index
    %c0_15 = arith.constant 0 : index
    %c0_16 = arith.constant 0 : index
    %31 = vector.load %arg7[%c0_14, %c0_15, %c0_16] : memref<1x8x32xf32, #tpu.memory_space<vmem>>, vector<1x8x32xf32>
    %32 = vector.shape_cast %31 : vector<1x8x32xf32> to vector<8x32xf32>
    %33 = vector.shape_cast %30 : vector<8x32xf32> to vector<1x8x32xf32>
    tpu.vector_store %arg7[%c0_14, %c0_15, %c0_16], %33 {strides = array<i32>} : memref<1x8x32xf32, #tpu.memory_space<vmem>>, vector<1x8x32xf32>,
    %34 = arith.truncf %30 : vector<8x32xf32> to vector<8x32xbf16>
    %c0_17 = arith.constant 0 : index
    %c0_18 = arith.constant 0 : index
    %c0_19 = arith.constant 0 : index
    %35 = vector.load %arg8[%c0_17, %c0_18, %c0_19] : memref<1x8x32xbf16, #tpu.memory_space<vmem>>, vector<1x8x32xbf16>
    %36 = vector.shape_cast %35 : vector<1x8x32xbf16> to vector<8x32xbf16>
    %37 = vector.shape_cast %34 : vector<8x32xbf16> to vector<1x8x32xbf16>
    tpu.vector_store %arg8[%c0_17, %c0_18, %c0_19], %37 {strides = array<i32>} : memref<1x8x32xbf16, #tpu.memory_space<vmem>>, vector<1x8x32xbf16>,
    return
  }
  func.func @transform_0(%arg0: i32, %arg1: i32) -> (i32, i32, i32) {
    %c0_i32 = arith.constant 0 : i32
    %c0_i32_0 = arith.constant 0 : i32
    return %arg0, %arg1, %c0_i32 : i32, i32, i32
  }
  func.func @transform_1(%arg0: i32, %arg1: i32) -> (i32, i32) {
    %c0_i32 = arith.constant 0 : i32
    %c0_i32_0 = arith.constant 0 : i32
    return %arg1, %c0_i32 : i32, i32
  }
  func.func @transform_2(%arg0: i32, %arg1: i32) -> (i32, i32) {
    %c0_i32 = arith.constant 0 : i32
    %c0_i32_0 = arith.constant 0 : i32
    %c0_i32_1 = arith.constant 0 : i32
    return %c0_i32, %c0_i32_0 : i32, i32
  }
  func.func @transform_3(%arg0: i32, %arg1: i32) -> (i32, i32) {
    %c0_i32 = arith.constant 0 : i32
    %c0_i32_0 = arith.constant 0 : i32
    %c0_i32_1 = arith.constant 0 : i32
    return %c0_i32, %c0_i32_0 : i32, i32
  }
  func.func @transform_4(%arg0: i32, %arg1: i32) -> (i32, i32) {
    %c0_i32 = arith.constant 0 : i32
    %c0_i32_0 = arith.constant 0 : i32
    %c0_i32_1 = arith.constant 0 : i32
    return %c0_i32, %c0_i32_0 : i32, i32
  }
  func.func @transform_5(%arg0: i32, %arg1: i32) -> (i32, i32, i32) {
    %c0_i32 = arith.constant 0 : i32
    %c0_i32_0 = arith.constant 0 : i32
    return %arg0, %arg1, %c0_i32 : i32, i32, i32
  }
  func.func @transform_6(%arg0: i32, %arg1: i32) -> (i32, i32, i32) {
    %c0_i32 = arith.constant 0 : i32
    %c0_i32_0 = arith.constant 0 : i32
    return %arg0, %arg1, %c0_i32 : i32, i32, i32
  }
}

module attributes {stable_mosaic.version = 11 : i64} {
  func.func @_matmul_1k_kernel(%arg0: i32, %arg1: i32, %arg2: memref<8x32xbf16, #tpu.memory_space<vmem>>, %arg3: memref<32x96xbf16, #tpu.memory_space<vmem>>, %arg4: memref<1x96xf32, #tpu.memory_space<vmem>>, %arg5: memref<8x96xbf16, #tpu.memory_space<vmem>>) attributes {dimension_semantics = [#tpu.dimension_semantics<parallel>, #tpu.dimension_semantics<parallel>], iteration_bounds = array<i64: 2, 1>, scalar_prefetch = 0 : i64, scratch_operands = 0 : i64, tpu.core_type = #tpu.core_type<tc>, window_params = [{transform_indices = @transform_0, window_bounds = array<i64: 8, 32>}, {transform_indices = @transform_1, window_bounds = array<i64: 32, 96>}, {transform_indices = @transform_2, window_bounds = array<i64: 1, 96>}, {transform_indices = @transform_3, window_bounds = array<i64: 8, 96>}]} {
    %c0 = arith.constant 0 : index
    %c0_0 = arith.constant 0 : index
    %0 = vector.load %arg2[%c0, %c0_0] : memref<8x32xbf16, #tpu.memory_space<vmem>>, vector<8x32xbf16>
    %c0_1 = arith.constant 0 : index
    %c0_2 = arith.constant 0 : index
    %1 = vector.load %arg3[%c0_1, %c0_2] : memref<32x96xbf16, #tpu.memory_space<vmem>>, vector<32x96xbf16>
    %cst = arith.constant dense<0.000000e+00> : vector<8x96xf32>
    %2 = tpu.matmul %0, %1, %cst {dimension_numbers = #tpu.dot_dimension_numbers<[1], [0], [0], [1], [0, 0, 1, 1], [], []>} : vector<8x32xbf16>, vector<32x96xbf16>, vector<8x96xf32> -> vector<8x96xf32>
    %c0_3 = arith.constant 0 : index
    %c0_4 = arith.constant 0 : index
    %3 = vector.load %arg4[%c0_3, %c0_4] : memref<1x96xf32, #tpu.memory_space<vmem>>, vector<1x96xf32>
    %4 = vector.broadcast %3 : vector<1x96xf32> to vector<8x96xf32>
    %5 = arith.addf %2, %4 : vector<8x96xf32>
    %6 = arith.truncf %5 : vector<8x96xf32> to vector<8x96xbf16>
    %c0_5 = arith.constant 0 : index
    %c0_6 = arith.constant 0 : index
    %7 = vector.load %arg5[%c0_5, %c0_6] : memref<8x96xbf16, #tpu.memory_space<vmem>>, vector<8x96xbf16>
    tpu.vector_store %arg5[%c0_5, %c0_6], %6 {strides = array<i32>} : memref<8x96xbf16, #tpu.memory_space<vmem>>, vector<8x96xbf16>,
    return
  }
  func.func @transform_0(%arg0: i32, %arg1: i32) -> (i32, i32) {
    %c0_i32 = arith.constant 0 : i32
    %c0_i32_0 = arith.constant 0 : i32
    return %arg0, %c0_i32 : i32, i32
  }
  func.func @transform_1(%arg0: i32, %arg1: i32) -> (i32, i32) {
    %c0_i32 = arith.constant 0 : i32
    %c0_i32_0 = arith.constant 0 : i32
    return %c0_i32, %arg1 : i32, i32
  }
  func.func @transform_2(%arg0: i32, %arg1: i32) -> (i32, i32) {
    %c0_i32 = arith.constant 0 : i32
    %c0_i32_0 = arith.constant 0 : i32
    return %c0_i32, %arg1 : i32, i32
  }
  func.func @transform_3(%arg0: i32, %arg1: i32) -> (i32, i32) {
    %c0_i32 = arith.constant 0 : i32
    return %arg0, %arg1 : i32, i32
  }
}

module attributes {stable_mosaic.version = 11 : i64} {
  func.func @_matmul_res_ln_1k_kernel(%arg0: i32, %arg1: memref<8x32xbf16, #tpu.memory_space<vmem>>, %arg2: memref<32x32xbf16, #tpu.memory_space<vmem>>, %arg3: memref<1x32xf32, #tpu.memory_space<vmem>>, %arg4: memref<8x32xf32, #tpu.memory_space<vmem>>, %arg5: memref<1x32xf32, #tpu.memory_space<vmem>>, %arg6: memref<1x32xf32, #tpu.memory_space<vmem>>, %arg7: memref<8x32xf32, #tpu.memory_space<vmem>>, %arg8: memref<8x32xbf16, #tpu.memory_space<vmem>>) attributes {dimension_semantics = [#tpu.dimension_semantics<parallel>], iteration_bounds = array<i64: 2>, scalar_prefetch = 0 : i64, scratch_operands = 0 : i64, tpu.core_type = #tpu.core_type<tc>, window_params = [{transform_indices = @transform_0, window_bounds = array<i64: 8, 32>}, {pipeline_mode = #tpu.pipeline_mode<synchronous>, transform_indices = @transform_1, window_bounds = array<i64: 32, 32>}, {pipeline_mode = #tpu.pipeline_mode<synchronous>, transform_indices = @transform_2, window_bounds = array<i64: 1, 32>}, {transform_indices = @transform_3, window_bounds = array<i64: 8, 32>}, {pipeline_mode = #tpu.pipeline_mode<synchronous>, transform_indices = @transform_4, window_bounds = array<i64: 1, 32>}, {pipeline_mode = #tpu.pipeline_mode<synchronous>, transform_indices = @transform_5, window_bounds = array<i64: 1, 32>}, {transform_indices = @transform_6, window_bounds = array<i64: 8, 32>}, {transform_indices = @transform_7, window_bounds = array<i64: 8, 32>}]} {
    %c0 = arith.constant 0 : index
    %c0_0 = arith.constant 0 : index
    %0 = vector.load %arg1[%c0, %c0_0] : memref<8x32xbf16, #tpu.memory_space<vmem>>, vector<8x32xbf16>
    %c0_1 = arith.constant 0 : index
    %c0_2 = arith.constant 0 : index
    %1 = vector.load %arg2[%c0_1, %c0_2] : memref<32x32xbf16, #tpu.memory_space<vmem>>, vector<32x32xbf16>
    %cst = arith.constant dense<0.000000e+00> : vector<8x32xf32>
    %2 = tpu.matmul %0, %1, %cst {dimension_numbers = #tpu.dot_dimension_numbers<[1], [0], [0], [1], [0, 0, 1, 1], [], []>} : vector<8x32xbf16>, vector<32x32xbf16>, vector<8x32xf32> -> vector<8x32xf32>
    %c0_3 = arith.constant 0 : index
    %c0_4 = arith.constant 0 : index
    %3 = vector.load %arg3[%c0_3, %c0_4] : memref<1x32xf32, #tpu.memory_space<vmem>>, vector<1x32xf32>
    %4 = vector.broadcast %3 : vector<1x32xf32> to vector<8x32xf32>
    %5 = arith.addf %2, %4 : vector<8x32xf32>
    %c0_5 = arith.constant 0 : index
    %c0_6 = arith.constant 0 : index
    %6 = vector.load %arg4[%c0_5, %c0_6] : memref<8x32xf32, #tpu.memory_space<vmem>>, vector<8x32xf32>
    %7 = arith.addf %5, %6 : vector<8x32xf32>
    %c0_7 = arith.constant 0 : index
    %c0_8 = arith.constant 0 : index
    %8 = vector.load %arg5[%c0_7, %c0_8] : memref<1x32xf32, #tpu.memory_space<vmem>>, vector<1x32xf32>
    %c0_9 = arith.constant 0 : index
    %c0_10 = arith.constant 0 : index
    %9 = vector.load %arg6[%c0_9, %c0_10] : memref<1x32xf32, #tpu.memory_space<vmem>>, vector<1x32xf32>
    %cst_11 = arith.constant dense<0.000000e+00> : vector<8xf32>
    %10 = vector.multi_reduction <add>, %7, %cst_11 [1] : vector<8x32xf32> to vector<8xf32>
    %11 = vector.shape_cast %10 : vector<8xf32> to vector<8x1xf32>
    %cst_12 = arith.constant 3.200000e+01 : f32
    %12 = vector.broadcast %cst_12 : f32 to vector<8x1xf32>
    %13 = arith.divf %11, %12 : vector<8x1xf32>
    %14 = vector.broadcast %13 : vector<8x1xf32> to vector<8x32xf32>
    %15 = arith.subf %7, %14 : vector<8x32xf32>
    %16 = arith.mulf %15, %15 : vector<8x32xf32>
    %cst_13 = arith.constant dense<0.000000e+00> : vector<8xf32>
    %17 = vector.multi_reduction <add>, %16, %cst_13 [1] : vector<8x32xf32> to vector<8xf32>
    %18 = vector.shape_cast %17 : vector<8xf32> to vector<8x1xf32>
    %cst_14 = arith.constant 3.200000e+01 : f32
    %19 = vector.broadcast %cst_14 : f32 to vector<8x1xf32>
    %20 = arith.divf %18, %19 : vector<8x1xf32>
    %21 = vector.broadcast %13 : vector<8x1xf32> to vector<8x32xf32>
    %22 = arith.subf %7, %21 : vector<8x32xf32>
    %cst_15 = arith.constant 9.99999996E-13 : f32
    %23 = vector.broadcast %cst_15 : f32 to vector<8x1xf32>
    %24 = arith.addf %20, %23 : vector<8x1xf32>
    %25 = math.rsqrt %24 : vector<8x1xf32>
    %26 = vector.broadcast %25 : vector<8x1xf32> to vector<8x32xf32>
    %27 = arith.mulf %22, %26 : vector<8x32xf32>
    %28 = vector.broadcast %8 : vector<1x32xf32> to vector<8x32xf32>
    %29 = arith.mulf %27, %28 : vector<8x32xf32>
    %30 = vector.broadcast %9 : vector<1x32xf32> to vector<8x32xf32>
    %31 = arith.addf %29, %30 : vector<8x32xf32>
    %c0_16 = arith.constant 0 : index
    %c0_17 = arith.constant 0 : index
    %32 = vector.load %arg7[%c0_16, %c0_17] : memref<8x32xf32, #tpu.memory_space<vmem>>, vector<8x32xf32>
    tpu.vector_store %arg7[%c0_16, %c0_17], %31 {strides = array<i32>} : memref<8x32xf32, #tpu.memory_space<vmem>>, vector<8x32xf32>,
    %33 = arith.truncf %31 : vector<8x32xf32> to vector<8x32xbf16>
    %c0_18 = arith.constant 0 : index
    %c0_19 = arith.constant 0 : index
    %34 = vector.load %arg8[%c0_18, %c0_19] : memref<8x32xbf16, #tpu.memory_space<vmem>>, vector<8x32xbf16>
    tpu.vector_store %arg8[%c0_18, %c0_19], %33 {strides = array<i32>} : memref<8x32xbf16, #tpu.memory_space<vmem>>, vector<8x32xbf16>,
    return
  }
  func.func @transform_0(%arg0: i32) -> (i32, i32) {
    %c0_i32 = arith.constant 0 : i32
    %c0_i32_0 = arith.constant 0 : i32
    return %arg0, %c0_i32 : i32, i32
  }
  func.func @transform_1(%arg0: i32) -> (i32, i32) {
    %c0_i32 = arith.constant 0 : i32
    %c0_i32_0 = arith.constant 0 : i32
    %c0_i32_1 = arith.constant 0 : i32
    return %c0_i32, %c0_i32_0 : i32, i32
  }
  func.func @transform_2(%arg0: i32) -> (i32, i32) {
    %c0_i32 = arith.constant 0 : i32
    %c0_i32_0 = arith.constant 0 : i32
    %c0_i32_1 = arith.constant 0 : i32
    return %c0_i32, %c0_i32_0 : i32, i32
  }
  func.func @transform_3(%arg0: i32) -> (i32, i32) {
    %c0_i32 = arith.constant 0 : i32
    %c0_i32_0 = arith.constant 0 : i32
    return %arg0, %c0_i32 : i32, i32
  }
  func.func @transform_4(%arg0: i32) -> (i32, i32) {
    %c0_i32 = arith.constant 0 : i32
    %c0_i32_0 = arith.constant 0 : i32
    %c0_i32_1 = arith.constant 0 : i32
    return %c0_i32, %c0_i32_0 : i32, i32
  }
  func.func @transform_5(%arg0: i32) -> (i32, i32) {
    %c0_i32 = arith.constant 0 : i32
    %c0_i32_0 = arith.constant 0 : i32
    %c0_i32_1 = arith.constant 0 : i32
    return %c0_i32, %c0_i32_0 : i32, i32
  }
  func.func @transform_6(%arg0: i32) -> (i32, i32) {
    %c0_i32 = arith.constant 0 : i32
    %c0_i32_0 = arith.constant 0 : i32
    return %arg0, %c0_i32 : i32, i32
  }
  func.func @transform_7(%arg0: i32) -> (i32, i32) {
    %c0_i32 = arith.constant 0 : i32
    %c0_i32_0 = arith.constant 0 : i32
    return %arg0, %c0_i32 : i32, i32
  }
}

module attributes {stable_mosaic.version = 11 : i64} {
  func.func @_attn_full_kernel(%arg0: i32, %arg1: memref<1x8x96xbf16, #tpu.memory_space<vmem>>, %arg2: memref<1x1x8xf32, #tpu.memory_space<vmem>>, %arg3: memref<1x8x32xbf16, #tpu.memory_space<vmem>>) attributes {dimension_semantics = [#tpu.dimension_semantics<parallel>], iteration_bounds = array<i64: 2>, scalar_prefetch = 0 : i64, scratch_operands = 0 : i64, tpu.core_type = #tpu.core_type<tc>, window_params = [{transform_indices = @transform_0, window_bounds = array<i64: 1, 8, 96>}, {transform_indices = @transform_1, window_bounds = array<i64: 1, 1, 8>}, {transform_indices = @transform_2, window_bounds = array<i64: 1, 8, 32>}]} {
    %c0 = arith.constant 0 : index
    %c0_0 = arith.constant 0 : index
    %c0_1 = arith.constant 0 : index
    %0 = vector.load %arg1[%c0, %c0_0, %c0_1] : memref<1x8x96xbf16, #tpu.memory_space<vmem>>, vector<1x8x96xbf16>
    %1 = vector.shape_cast %0 : vector<1x8x96xbf16> to vector<8x96xbf16>
    %2 = vector.extract_strided_slice %1 {offsets = [0, 0], sizes = [8, 32], strides = [1, 1]} : vector<8x96xbf16> to vector<8x32xbf16>
    %3 = vector.extract_strided_slice %1 {offsets = [0, 32], sizes = [8, 32], strides = [1, 1]} : vector<8x96xbf16> to vector<8x32xbf16>
    %4 = vector.extract_strided_slice %1 {offsets = [0, 64], sizes = [8, 32], strides = [1, 1]} : vector<8x96xbf16> to vector<8x32xbf16>
    %c0_2 = arith.constant 0 : index
    %c0_3 = arith.constant 0 : index
    %c0_4 = arith.constant 0 : index
    %5 = vector.load %arg2[%c0_2, %c0_3, %c0_4] : memref<1x1x8xf32, #tpu.memory_space<vmem>>, vector<1x1x8xf32>
    %6 = vector.shape_cast %5 : vector<1x1x8xf32> to vector<1x8xf32>
    %7 = vector.extract_strided_slice %2 {offsets = [0, 0], sizes = [8, 16], strides = [1, 1]} : vector<8x32xbf16> to vector<8x16xbf16>
    %8 = vector.extract_strided_slice %3 {offsets = [0, 0], sizes = [8, 16], strides = [1, 1]} : vector<8x32xbf16> to vector<8x16xbf16>
    %9 = vector.extract_strided_slice %4 {offsets = [0, 0], sizes = [8, 16], strides = [1, 1]} : vector<8x32xbf16> to vector<8x16xbf16>
    %cst = arith.constant dense<0.000000e+00> : vector<8x8xf32>
    %10 = tpu.matmul %7, %8, %cst {dimension_numbers = #tpu.dot_dimension_numbers<[1], [1], [0], [0], [0, 0, 1, 0], [], []>} : vector<8x16xbf16>, vector<8x16xbf16>, vector<8x8xf32> -> vector<8x8xf32>
    %11 = vector.broadcast %6 : vector<1x8xf32> to vector<8x8xf32>
    %12 = arith.addf %10, %11 : vector<8x8xf32>
    %cst_5 = arith.constant dense<0xFF800000> : vector<8xf32>
    %13 = vector.multi_reduction <maximumf>, %12, %cst_5 [1] : vector<8x8xf32> to vector<8xf32>
    %14 = vector.shape_cast %13 : vector<8xf32> to vector<8x1xf32>
    %15 = vector.broadcast %14 : vector<8x1xf32> to vector<8x8xf32>
    %16 = arith.subf %12, %15 : vector<8x8xf32>
    %17 = math.exp %16 : vector<8x8xf32>
    %cst_6 = arith.constant dense<0.000000e+00> : vector<8xf32>
    %18 = vector.multi_reduction <add>, %17, %cst_6 [1] : vector<8x8xf32> to vector<8xf32>
    %19 = vector.shape_cast %18 : vector<8xf32> to vector<8x1xf32>
    %20 = tpu.reciprocal %19 {approx = true} : vector<8x1xf32> -> vector<8x1xf32>
    %21 = vector.broadcast %20 : vector<8x1xf32> to vector<8x8xf32>
    %22 = arith.mulf %17, %21 : vector<8x8xf32>
    %23 = arith.truncf %22 : vector<8x8xf32> to vector<8x8xbf16>
    %cst_7 = arith.constant dense<0.000000e+00> : vector<8x16xf32>
    %24 = tpu.matmul %23, %9, %cst_7 {dimension_numbers = #tpu.dot_dimension_numbers<[1], [0], [0], [1], [0, 0, 1, 1], [], []>} : vector<8x8xbf16>, vector<8x16xbf16>, vector<8x16xf32> -> vector<8x16xf32>
    %25 = vector.extract_strided_slice %2 {offsets = [0, 16], sizes = [8, 16], strides = [1, 1]} : vector<8x32xbf16> to vector<8x16xbf16>
    %26 = vector.extract_strided_slice %3 {offsets = [0, 16], sizes = [8, 16], strides = [1, 1]} : vector<8x32xbf16> to vector<8x16xbf16>
    %27 = vector.extract_strided_slice %4 {offsets = [0, 16], sizes = [8, 16], strides = [1, 1]} : vector<8x32xbf16> to vector<8x16xbf16>
    %cst_8 = arith.constant dense<0.000000e+00> : vector<8x8xf32>
    %28 = tpu.matmul %25, %26, %cst_8 {dimension_numbers = #tpu.dot_dimension_numbers<[1], [1], [0], [0], [0, 0, 1, 0], [], []>} : vector<8x16xbf16>, vector<8x16xbf16>, vector<8x8xf32> -> vector<8x8xf32>
    %29 = vector.broadcast %6 : vector<1x8xf32> to vector<8x8xf32>
    %30 = arith.addf %28, %29 : vector<8x8xf32>
    %cst_9 = arith.constant dense<0xFF800000> : vector<8xf32>
    %31 = vector.multi_reduction <maximumf>, %30, %cst_9 [1] : vector<8x8xf32> to vector<8xf32>
    %32 = vector.shape_cast %31 : vector<8xf32> to vector<8x1xf32>
    %33 = vector.broadcast %32 : vector<8x1xf32> to vector<8x8xf32>
    %34 = arith.subf %30, %33 : vector<8x8xf32>
    %35 = math.exp %34 : vector<8x8xf32>
    %cst_10 = arith.constant dense<0.000000e+00> : vector<8xf32>
    %36 = vector.multi_reduction <add>, %35, %cst_10 [1] : vector<8x8xf32> to vector<8xf32>
    %37 = vector.shape_cast %36 : vector<8xf32> to vector<8x1xf32>
    %38 = tpu.reciprocal %37 {approx = true} : vector<8x1xf32> -> vector<8x1xf32>
    %39 = vector.broadcast %38 : vector<8x1xf32> to vector<8x8xf32>
    %40 = arith.mulf %35, %39 : vector<8x8xf32>
    %41 = arith.truncf %40 : vector<8x8xf32> to vector<8x8xbf16>
    %cst_11 = arith.constant dense<0.000000e+00> : vector<8x16xf32>
    %42 = tpu.matmul %41, %27, %cst_11 {dimension_numbers = #tpu.dot_dimension_numbers<[1], [0], [0], [1], [0, 0, 1, 1], [], []>} : vector<8x8xbf16>, vector<8x16xbf16>, vector<8x16xf32> -> vector<8x16xf32>
    %43 = tpu.concatenate %24, %42 in 1 : vector<8x16xf32>, vector<8x16xf32> -> vector<8x32xf32>
    %44 = arith.truncf %43 : vector<8x32xf32> to vector<8x32xbf16>
    %c0_12 = arith.constant 0 : index
    %c0_13 = arith.constant 0 : index
    %c0_14 = arith.constant 0 : index
    %45 = vector.load %arg3[%c0_12, %c0_13, %c0_14] : memref<1x8x32xbf16, #tpu.memory_space<vmem>>, vector<1x8x32xbf16>
    %46 = vector.shape_cast %45 : vector<1x8x32xbf16> to vector<8x32xbf16>
    %47 = vector.shape_cast %44 : vector<8x32xbf16> to vector<1x8x32xbf16>
    tpu.vector_store %arg3[%c0_12, %c0_13, %c0_14], %47 {strides = array<i32>} : memref<1x8x32xbf16, #tpu.memory_space<vmem>>, vector<1x8x32xbf16>,
    return
  }
  func.func @transform_0(%arg0: i32) -> (i32, i32, i32) {
    %c0_i32 = arith.constant 0 : i32
    %c0_i32_0 = arith.constant 0 : i32
    %c0_i32_1 = arith.constant 0 : i32
    return %arg0, %c0_i32, %c0_i32_0 : i32, i32, i32
  }
  func.func @transform_1(%arg0: i32) -> (i32, i32, i32) {
    %c0_i32 = arith.constant 0 : i32
    %c0_i32_0 = arith.constant 0 : i32
    %c0_i32_1 = arith.constant 0 : i32
    return %arg0, %c0_i32, %c0_i32_0 : i32, i32, i32
  }
  func.func @transform_2(%arg0: i32) -> (i32, i32, i32) {
    %c0_i32 = arith.constant 0 : i32
    %c0_i32_0 = arith.constant 0 : i32
    %c0_i32_1 = arith.constant 0 : i32
    return %arg0, %c0_i32, %c0_i32_0 : i32, i32, i32
  }
}

module attributes {stable_mosaic.version = 11 : i64} {
  func.func @_matmul_1k_kernel(%arg0: i32, %arg1: i32, %arg2: memref<8x32xbf16, #tpu.memory_space<vmem>>, %arg3: memref<32x64xbf16, #tpu.memory_space<vmem>>, %arg4: memref<1x64xf32, #tpu.memory_space<vmem>>, %arg5: memref<8x64xbf16, #tpu.memory_space<vmem>>) attributes {dimension_semantics = [#tpu.dimension_semantics<parallel>, #tpu.dimension_semantics<parallel>], iteration_bounds = array<i64: 2, 1>, scalar_prefetch = 0 : i64, scratch_operands = 0 : i64, tpu.core_type = #tpu.core_type<tc>, window_params = [{transform_indices = @transform_0, window_bounds = array<i64: 8, 32>}, {transform_indices = @transform_1, window_bounds = array<i64: 32, 64>}, {transform_indices = @transform_2, window_bounds = array<i64: 1, 64>}, {transform_indices = @transform_3, window_bounds = array<i64: 8, 64>}]} {
    %c0 = arith.constant 0 : index
    %c0_0 = arith.constant 0 : index
    %0 = vector.load %arg2[%c0, %c0_0] : memref<8x32xbf16, #tpu.memory_space<vmem>>, vector<8x32xbf16>
    %c0_1 = arith.constant 0 : index
    %c0_2 = arith.constant 0 : index
    %1 = vector.load %arg3[%c0_1, %c0_2] : memref<32x64xbf16, #tpu.memory_space<vmem>>, vector<32x64xbf16>
    %cst = arith.constant dense<0.000000e+00> : vector<8x64xf32>
    %2 = tpu.matmul %0, %1, %cst {dimension_numbers = #tpu.dot_dimension_numbers<[1], [0], [0], [1], [0, 0, 1, 1], [], []>} : vector<8x32xbf16>, vector<32x64xbf16>, vector<8x64xf32> -> vector<8x64xf32>
    %c0_3 = arith.constant 0 : index
    %c0_4 = arith.constant 0 : index
    %3 = vector.load %arg4[%c0_3, %c0_4] : memref<1x64xf32, #tpu.memory_space<vmem>>, vector<1x64xf32>
    %4 = vector.broadcast %3 : vector<1x64xf32> to vector<8x64xf32>
    %5 = arith.addf %2, %4 : vector<8x64xf32>
    %cst_5 = arith.constant 5.000000e-01 : f32
    %6 = vector.broadcast %cst_5 : f32 to vector<8x64xf32>
    %7 = arith.mulf %6, %5 : vector<8x64xf32>
    %cst_6 = arith.constant 4.471500e-02 : f32
    %8 = vector.broadcast %cst_6 : f32 to vector<8x64xf32>
    %9 = arith.mulf %8, %5 : vector<8x64xf32>
    %10 = arith.mulf %9, %5 : vector<8x64xf32>
    %11 = arith.mulf %10, %5 : vector<8x64xf32>
    %12 = arith.addf %5, %11 : vector<8x64xf32>
    %cst_7 = arith.constant 0.797884583 : f32
    %13 = vector.broadcast %cst_7 : f32 to vector<8x64xf32>
    %14 = arith.mulf %13, %12 : vector<8x64xf32>
    %15 = math.tanh %14 : vector<8x64xf32>
    %cst_8 = arith.constant 1.000000e+00 : f32
    %16 = vector.broadcast %cst_8 : f32 to vector<8x64xf32>
    %17 = arith.addf %16, %15 : vector<8x64xf32>
    %18 = arith.mulf %7, %17 : vector<8x64xf32>
    %19 = arith.truncf %18 : vector<8x64xf32> to vector<8x64xbf16>
    %c0_9 = arith.constant 0 : index
    %c0_10 = arith.constant 0 : index
    %20 = vector.load %arg5[%c0_9, %c0_10] : memref<8x64xbf16, #tpu.memory_space<vmem>>, vector<8x64xbf16>
    tpu.vector_store %arg5[%c0_9, %c0_10], %19 {strides = array<i32>} : memref<8x64xbf16, #tpu.memory_space<vmem>>, vector<8x64xbf16>,
    return
  }
  func.func @transform_0(%arg0: i32, %arg1: i32) -> (i32, i32) {
    %c0_i32 = arith.constant 0 : i32
    %c0_i32_0 = arith.constant 0 : i32
    return %arg0, %c0_i32 : i32, i32
  }
  func.func @transform_1(%arg0: i32, %arg1: i32) -> (i32, i32) {
    %c0_i32 = arith.constant 0 : i32
    %c0_i32_0 = arith.constant 0 : i32
    return %c0_i32, %arg1 : i32, i32
  }
  func.func @transform_2(%arg0: i32, %arg1: i32) -> (i32, i32) {
    %c0_i32 = arith.constant 0 : i32
    %c0_i32_0 = arith.constant 0 : i32
    return %c0_i32, %arg1 : i32, i32
  }
  func.func @transform_3(%arg0: i32, %arg1: i32) -> (i32, i32) {
    %c0_i32 = arith.constant 0 : i32
    return %arg0, %arg1 : i32, i32
  }
}

module attributes {stable_mosaic.version = 11 : i64} {
  func.func @_matmul_res_ln_1k_kernel(%arg0: i32, %arg1: memref<8x64xbf16, #tpu.memory_space<vmem>>, %arg2: memref<64x32xbf16, #tpu.memory_space<vmem>>, %arg3: memref<1x32xf32, #tpu.memory_space<vmem>>, %arg4: memref<8x32xf32, #tpu.memory_space<vmem>>, %arg5: memref<1x32xf32, #tpu.memory_space<vmem>>, %arg6: memref<1x32xf32, #tpu.memory_space<vmem>>, %arg7: memref<8x32xf32, #tpu.memory_space<vmem>>, %arg8: memref<8x32xbf16, #tpu.memory_space<vmem>>) attributes {dimension_semantics = [#tpu.dimension_semantics<parallel>], iteration_bounds = array<i64: 2>, scalar_prefetch = 0 : i64, scratch_operands = 0 : i64, tpu.core_type = #tpu.core_type<tc>, window_params = [{transform_indices = @transform_0, window_bounds = array<i64: 8, 64>}, {pipeline_mode = #tpu.pipeline_mode<synchronous>, transform_indices = @transform_1, window_bounds = array<i64: 64, 32>}, {pipeline_mode = #tpu.pipeline_mode<synchronous>, transform_indices = @transform_2, window_bounds = array<i64: 1, 32>}, {transform_indices = @transform_3, window_bounds = array<i64: 8, 32>}, {pipeline_mode = #tpu.pipeline_mode<synchronous>, transform_indices = @transform_4, window_bounds = array<i64: 1, 32>}, {pipeline_mode = #tpu.pipeline_mode<synchronous>, transform_indices = @transform_5, window_bounds = array<i64: 1, 32>}, {transform_indices = @transform_6, window_bounds = array<i64: 8, 32>}, {transform_indices = @transform_7, window_bounds = array<i64: 8, 32>}]} {
    %c0 = arith.constant 0 : index
    %c0_0 = arith.constant 0 : index
    %0 = vector.load %arg1[%c0, %c0_0] : memref<8x64xbf16, #tpu.memory_space<vmem>>, vector<8x64xbf16>
    %c0_1 = arith.constant 0 : index
    %c0_2 = arith.constant 0 : index
    %1 = vector.load %arg2[%c0_1, %c0_2] : memref<64x32xbf16, #tpu.memory_space<vmem>>, vector<64x32xbf16>
    %cst = arith.constant dense<0.000000e+00> : vector<8x32xf32>
    %2 = tpu.matmul %0, %1, %cst {dimension_numbers = #tpu.dot_dimension_numbers<[1], [0], [0], [1], [0, 0, 1, 1], [], []>} : vector<8x64xbf16>, vector<64x32xbf16>, vector<8x32xf32> -> vector<8x32xf32>
    %c0_3 = arith.constant 0 : index
    %c0_4 = arith.constant 0 : index
    %3 = vector.load %arg3[%c0_3, %c0_4] : memref<1x32xf32, #tpu.memory_space<vmem>>, vector<1x32xf32>
    %4 = vector.broadcast %3 : vector<1x32xf32> to vector<8x32xf32>
    %5 = arith.addf %2, %4 : vector<8x32xf32>
    %c0_5 = arith.constant 0 : index
    %c0_6 = arith.constant 0 : index
    %6 = vector.load %arg4[%c0_5, %c0_6] : memref<8x32xf32, #tpu.memory_space<vmem>>, vector<8x32xf32>
    %7 = arith.addf %5, %6 : vector<8x32xf32>
    %c0_7 = arith.constant 0 : index
    %c0_8 = arith.constant 0 : index
    %8 = vector.load %arg5[%c0_7, %c0_8] : memref<1x32xf32, #tpu.memory_space<vmem>>, vector<1x32xf32>
    %c0_9 = arith.constant 0 : index
    %c0_10 = arith.constant 0 : index
    %9 = vector.load %arg6[%c0_9, %c0_10] : memref<1x32xf32, #tpu.memory_space<vmem>>, vector<1x32xf32>
    %cst_11 = arith.constant dense<0.000000e+00> : vector<8xf32>
    %10 = vector.multi_reduction <add>, %7, %cst_11 [1] : vector<8x32xf32> to vector<8xf32>
    %11 = vector.shape_cast %10 : vector<8xf32> to vector<8x1xf32>
    %cst_12 = arith.constant 3.200000e+01 : f32
    %12 = vector.broadcast %cst_12 : f32 to vector<8x1xf32>
    %13 = arith.divf %11, %12 : vector<8x1xf32>
    %14 = vector.broadcast %13 : vector<8x1xf32> to vector<8x32xf32>
    %15 = arith.subf %7, %14 : vector<8x32xf32>
    %16 = arith.mulf %15, %15 : vector<8x32xf32>
    %cst_13 = arith.constant dense<0.000000e+00> : vector<8xf32>
    %17 = vector.multi_reduction <add>, %16, %cst_13 [1] : vector<8x32xf32> to vector<8xf32>
    %18 = vector.shape_cast %17 : vector<8xf32> to vector<8x1xf32>
    %cst_14 = arith.constant 3.200000e+01 : f32
    %19 = vector.broadcast %cst_14 : f32 to vector<8x1xf32>
    %20 = arith.divf %18, %19 : vector<8x1xf32>
    %21 = vector.broadcast %13 : vector<8x1xf32> to vector<8x32xf32>
    %22 = arith.subf %7, %21 : vector<8x32xf32>
    %cst_15 = arith.constant 9.99999996E-13 : f32
    %23 = vector.broadcast %cst_15 : f32 to vector<8x1xf32>
    %24 = arith.addf %20, %23 : vector<8x1xf32>
    %25 = math.rsqrt %24 : vector<8x1xf32>
    %26 = vector.broadcast %25 : vector<8x1xf32> to vector<8x32xf32>
    %27 = arith.mulf %22, %26 : vector<8x32xf32>
    %28 = vector.broadcast %8 : vector<1x32xf32> to vector<8x32xf32>
    %29 = arith.mulf %27, %28 : vector<8x32xf32>
    %30 = vector.broadcast %9 : vector<1x32xf32> to vector<8x32xf32>
    %31 = arith.addf %29, %30 : vector<8x32xf32>
    %c0_16 = arith.constant 0 : index
    %c0_17 = arith.constant 0 : index
    %32 = vector.load %arg7[%c0_16, %c0_17] : memref<8x32xf32, #tpu.memory_space<vmem>>, vector<8x32xf32>
    tpu.vector_store %arg7[%c0_16, %c0_17], %31 {strides = array<i32>} : memref<8x32xf32, #tpu.memory_space<vmem>>, vector<8x32xf32>,
    %33 = arith.truncf %31 : vector<8x32xf32> to vector<8x32xbf16>
    %c0_18 = arith.constant 0 : index
    %c0_19 = arith.constant 0 : index
    %34 = vector.load %arg8[%c0_18, %c0_19] : memref<8x32xbf16, #tpu.memory_space<vmem>>, vector<8x32xbf16>
    tpu.vector_store %arg8[%c0_18, %c0_19], %33 {strides = array<i32>} : memref<8x32xbf16, #tpu.memory_space<vmem>>, vector<8x32xbf16>,
    return
  }
  func.func @transform_0(%arg0: i32) -> (i32, i32) {
    %c0_i32 = arith.constant 0 : i32
    %c0_i32_0 = arith.constant 0 : i32
    return %arg0, %c0_i32 : i32, i32
  }
  func.func @transform_1(%arg0: i32) -> (i32, i32) {
    %c0_i32 = arith.constant 0 : i32
    %c0_i32_0 = arith.constant 0 : i32
    %c0_i32_1 = arith.constant 0 : i32
    return %c0_i32, %c0_i32_0 : i32, i32
  }
  func.func @transform_2(%arg0: i32) -> (i32, i32) {
    %c0_i32 = arith.constant 0 : i32
    %c0_i32_0 = arith.constant 0 : i32
    %c0_i32_1 = arith.constant 0 : i32
    return %c0_i32, %c0_i32_0 : i32, i32
  }
  func.func @transform_3(%arg0: i32) -> (i32, i32) {
    %c0_i32 = arith.constant 0 : i32
    %c0_i32_0 = arith.constant 0 : i32
    return %arg0, %c0_i32 : i32, i32
  }
  func.func @transform_4(%arg0: i32) -> (i32, i32) {
    %c0_i32 = arith.constant 0 : i32
    %c0_i32_0 = arith.constant 0 : i32
    %c0_i32_1 = arith.constant 0 : i32
    return %c0_i32, %c0_i32_0 : i32, i32
  }
  func.func @transform_5(%arg0: i32) -> (i32, i32) {
    %c0_i32 = arith.constant 0 : i32
    %c0_i32_0 = arith.constant 0 : i32
    %c0_i32_1 = arith.constant 0 : i32
    return %c0_i32, %c0_i32_0 : i32, i32
  }
  func.func @transform_6(%arg0: i32) -> (i32, i32) {
    %c0_i32 = arith.constant 0 : i32
    %c0_i32_0 = arith.constant 0 : i32
    return %arg0, %c0_i32 : i32, i32
  }
  func.func @transform_7(%arg0: i32) -> (i32, i32) {
    %c0_i32 = arith.constant 0 : i32
    %c0_i32_0 = arith.constant 0 : i32
    return %arg0, %c0_i32 : i32, i32
  }
}

module attributes {stable_mosaic.version = 11 : i64} {
  func.func @_matmul_res_ln_1k_kernel(%arg0: i32, %arg1: memref<8x64xbf16, #tpu.memory_space<vmem>>, %arg2: memref<64x32xbf16, #tpu.memory_space<vmem>>, %arg3: memref<1x32xf32, #tpu.memory_space<vmem>>, %arg4: memref<8x32xf32, #tpu.memory_space<vmem>>, %arg5: memref<1x32xf32, #tpu.memory_space<vmem>>, %arg6: memref<1x32xf32, #tpu.memory_space<vmem>>, %arg7: memref<8x32xf32, #tpu.memory_space<vmem>>, %arg8: memref<8x32xbf16, #tpu.memory_space<vmem>>) attributes {dimension_semantics = [#tpu.dimension_semantics<parallel>], iteration_bounds = array<i64: 2>, scalar_prefetch = 0 : i64, scratch_operands = 0 : i64, tpu.core_type = #tpu.core_type<tc>, window_params = [{transform_indices = @transform_0, window_bounds = array<i64: 8, 64>}, {pipeline_mode = #tpu.pipeline_mode<synchronous>, transform_indices = @transform_1, window_bounds = array<i64: 64, 32>}, {pipeline_mode = #tpu.pipeline_mode<synchronous>, transform_indices = @transform_2, window_bounds = array<i64: 1, 32>}, {transform_indices = @transform_3, window_bounds = array<i64: 8, 32>}, {pipeline_mode = #tpu.pipeline_mode<synchronous>, transform_indices = @transform_4, window_bounds = array<i64: 1, 32>}, {pipeline_mode = #tpu.pipeline_mode<synchronous>, transform_indices = @transform_5, window_bounds = array<i64: 1, 32>}, {transform_indices = @transform_6, window_bounds = array<i64: 8, 32>}, {transform_indices = @transform_7, window_bounds = array<i64: 8, 32>}]} {
    %c0 = arith.constant 0 : index
    %c0_0 = arith.constant 0 : index
    %0 = vector.load %arg1[%c0, %c0_0] : memref<8x64xbf16, #tpu.memory_space<vmem>>, vector<8x64xbf16>
    %c0_1 = arith.constant 0 : index
    %c0_2 = arith.constant 0 : index
    %1 = vector.load %arg2[%c0_1, %c0_2] : memref<64x32xbf16, #tpu.memory_space<vmem>>, vector<64x32xbf16>
    %cst = arith.constant dense<0.000000e+00> : vector<8x32xf32>
    %2 = tpu.matmul %0, %1, %cst {dimension_numbers = #tpu.dot_dimension_numbers<[1], [0], [0], [1], [0, 0, 1, 1], [], []>} : vector<8x64xbf16>, vector<64x32xbf16>, vector<8x32xf32> -> vector<8x32xf32>
    %c0_3 = arith.constant 0 : index
    %c0_4 = arith.constant 0 : index
    %3 = vector.load %arg3[%c0_3, %c0_4] : memref<1x32xf32, #tpu.memory_space<vmem>>, vector<1x32xf32>
    %4 = vector.broadcast %3 : vector<1x32xf32> to vector<8x32xf32>
    %5 = arith.addf %2, %4 : vector<8x32xf32>
    %c0_5 = arith.constant 0 : index
    %c0_6 = arith.constant 0 : index
    %6 = vector.load %arg4[%c0_5, %c0_6] : memref<8x32xf32, #tpu.memory_space<vmem>>, vector<8x32xf32>
    %7 = arith.addf %5, %6 : vector<8x32xf32>
    %c0_7 = arith.constant 0 : index
    %c0_8 = arith.constant 0 : index
    %8 = vector.load %arg5[%c0_7, %c0_8] : memref<1x32xf32, #tpu.memory_space<vmem>>, vector<1x32xf32>
    %c0_9 = arith.constant 0 : index
    %c0_10 = arith.constant 0 : index
    %9 = vector.load %arg6[%c0_9, %c0_10] : memref<1x32xf32, #tpu.memory_space<vmem>>, vector<1x32xf32>
    %cst_11 = arith.constant dense<0.000000e+00> : vector<8xf32>
    %10 = vector.multi_reduction <add>, %7, %cst_11 [1] : vector<8x32xf32> to vector<8xf32>
    %11 = vector.shape_cast %10 : vector<8xf32> to vector<8x1xf32>
    %cst_12 = arith.constant 3.200000e+01 : f32
    %12 = vector.broadcast %cst_12 : f32 to vector<8x1xf32>
    %13 = arith.divf %11, %12 : vector<8x1xf32>
    %14 = vector.broadcast %13 : vector<8x1xf32> to vector<8x32xf32>
    %15 = arith.subf %7, %14 : vector<8x32xf32>
    %16 = arith.mulf %15, %15 : vector<8x32xf32>
    %cst_13 = arith.constant dense<0.000000e+00> : vector<8xf32>
    %17 = vector.multi_reduction <add>, %16, %cst_13 [1] : vector<8x32xf32> to vector<8xf32>
    %18 = vector.shape_cast %17 : vector<8xf32> to vector<8x1xf32>
    %cst_14 = arith.constant 3.200000e+01 : f32
    %19 = vector.broadcast %cst_14 : f32 to vector<8x1xf32>
    %20 = arith.divf %18, %19 : vector<8x1xf32>
    %21 = vector.broadcast %13 : vector<8x1xf32> to vector<8x32xf32>
    %22 = arith.subf %7, %21 : vector<8x32xf32>
    %cst_15 = arith.constant 9.99999996E-13 : f32
    %23 = vector.broadcast %cst_15 : f32 to vector<8x1xf32>
    %24 = arith.addf %20, %23 : vector<8x1xf32>
    %25 = math.rsqrt %24 : vector<8x1xf32>
    %26 = vector.broadcast %25 : vector<8x1xf32> to vector<8x32xf32>
    %27 = arith.mulf %22, %26 : vector<8x32xf32>
    %28 = vector.broadcast %8 : vector<1x32xf32> to vector<8x32xf32>
    %29 = arith.mulf %27, %28 : vector<8x32xf32>
    %30 = vector.broadcast %9 : vector<1x32xf32> to vector<8x32xf32>
    %31 = arith.addf %29, %30 : vector<8x32xf32>
    %c0_16 = arith.constant 0 : index
    %c0_17 = arith.constant 0 : index
    %32 = vector.load %arg7[%c0_16, %c0_17] : memref<8x32xf32, #tpu.memory_space<vmem>>, vector<8x32xf32>
    tpu.vector_store %arg7[%c0_16, %c0_17], %31 {strides = array<i32>} : memref<8x32xf32, #tpu.memory_space<vmem>>, vector<8x32xf32>,
    %33 = arith.truncf %31 : vector<8x32xf32> to vector<8x32xbf16>
    %c0_18 = arith.constant 0 : index
    %c0_19 = arith.constant 0 : index
    %34 = vector.load %arg8[%c0_18, %c0_19] : memref<8x32xbf16, #tpu.memory_space<vmem>>, vector<8x32xbf16>
    tpu.vector_store %arg8[%c0_18, %c0_19], %33 {strides = array<i32>} : memref<8x32xbf16, #tpu.memory_space<vmem>>, vector<8x32xbf16>,
    return
  }
  func.func @transform_0(%arg0: i32) -> (i32, i32) {
    %c0_i32 = arith.constant 0 : i32
    %c0_i32_0 = arith.constant 0 : i32
    return %arg0, %c0_i32 : i32, i32
  }
  func.func @transform_1(%arg0: i32) -> (i32, i32) {
    %c0_i32 = arith.constant 0 : i32
    %c0_i32_0 = arith.constant 0 : i32
    %c0_i32_1 = arith.constant 0 : i32
    return %c0_i32, %c0_i32_0 : i32, i32
  }
  func.func @transform_2(%arg0: i32) -> (i32, i32) {
    %c0_i32 = arith.constant 0 : i32
    %c0_i32_0 = arith.constant 0 : i32
    %c0_i32_1 = arith.constant 0 : i32
    return %c0_i32, %c0_i32_0 : i32, i32
  }
  func.func @transform_3(%arg0: i32) -> (i32, i32) {
    %c0_i32 = arith.constant 0 : i32
    %c0_i32_0 = arith.constant 0 : i32
    return %arg0, %c0_i32 : i32, i32
  }
  func.func @transform_4(%arg0: i32) -> (i32, i32) {
    %c0_i32 = arith.constant 0 : i32
    %c0_i32_0 = arith.constant 0 : i32
    %c0_i32_1 = arith.constant 0 : i32
    return %c0_i32, %c0_i32_0 : i32, i32
  }
  func.func @transform_5(%arg0: i32) -> (i32, i32) {
    %c0_i32 = arith.constant 0 : i32
    %c0_i32_0 = arith.constant 0 : i32
    %c0_i32_1 = arith.constant 0 : i32
    return %c0_i32, %c0_i32_0 : i32, i32
  }
  func.func @transform_6(%arg0: i32) -> (i32, i32) {
    %c0_i32 = arith.constant 0 : i32
    %c0_i32_0 = arith.constant 0 : i32
    return %arg0, %c0_i32 : i32, i32
  }
  func.func @transform_7(%arg0: i32) -> (i32, i32) {
    %c0_i32 = arith.constant 0 : i32
    %c0_i32_0 = arith.constant 0 : i32
    return %arg0, %c0_i32 : i32, i32
  }
}

module attributes {stable_mosaic.version = 11 : i64} {
  func.func @_matmul_1k_kernel(%arg0: i32, %arg1: i32, %arg2: memref<2x32xbf16, #tpu.memory_space<vmem>>, %arg3: memref<32x32xbf16, #tpu.memory_space<vmem>>, %arg4: memref<1x32xf32, #tpu.memory_space<vmem>>, %arg5: memref<2x32xf32, #tpu.memory_space<vmem>>) attributes {dimension_semantics = [#tpu.dimension_semantics<parallel>, #tpu.dimension_semantics<parallel>], iteration_bounds = array<i64: 1, 1>, scalar_prefetch = 0 : i64, scratch_operands = 0 : i64, tpu.core_type = #tpu.core_type<tc>, window_params = [{transform_indices = @transform_0, window_bounds = array<i64: 2, 32>}, {transform_indices = @transform_1, window_bounds = array<i64: 32, 32>}, {transform_indices = @transform_2, window_bounds = array<i64: 1, 32>}, {transform_indices = @transform_3, window_bounds = array<i64: 2, 32>}]} {
    %c0 = arith.constant 0 : index
    %c0_0 = arith.constant 0 : index
    %0 = vector.load %arg2[%c0, %c0_0] : memref<2x32xbf16, #tpu.memory_space<vmem>>, vector<2x32xbf16>
    %c0_1 = arith.constant 0 : index
    %c0_2 = arith.constant 0 : index
    %1 = vector.load %arg3[%c0_1, %c0_2] : memref<32x32xbf16, #tpu.memory_space<vmem>>, vector<32x32xbf16>
    %cst = arith.constant dense<0.000000e+00> : vector<2x32xf32>
    %2 = tpu.matmul %0, %1, %cst {dimension_numbers = #tpu.dot_dimension_numbers<[1], [0], [0], [1], [0, 0, 1, 1], [], []>} : vector<2x32xbf16>, vector<32x32xbf16>, vector<2x32xf32> -> vector<2x32xf32>
    %c0_3 = arith.constant 0 : index
    %c0_4 = arith.constant 0 : index
    %3 = vector.load %arg4[%c0_3, %c0_4] : memref<1x32xf32, #tpu.memory_space<vmem>>, vector<1x32xf32>
    %4 = vector.broadcast %3 : vector<1x32xf32> to vector<2x32xf32>
    %5 = arith.addf %2, %4 : vector<2x32xf32>
    %6 = math.tanh %5 : vector<2x32xf32>
    %c0_5 = arith.constant 0 : index
    %c0_6 = arith.constant 0 : index
    %7 = vector.load %arg5[%c0_5, %c0_6] : memref<2x32xf32, #tpu.memory_space<vmem>>, vector<2x32xf32>
    tpu.vector_store %arg5[%c0_5, %c0_6], %6 {strides = array<i32>} : memref<2x32xf32, #tpu.memory_space<vmem>>, vector<2x32xf32>,
    return
  }
  func.func @transform_0(%arg0: i32, %arg1: i32) -> (i32, i32) {
    %c0_i32 = arith.constant 0 : i32
    %c0_i32_0 = arith.constant 0 : i32
    return %arg0, %c0_i32 : i32, i32
  }
  func.func @transform_1(%arg0: i32, %arg1: i32) -> (i32, i32) {
    %c0_i32 = arith.constant 0 : i32
    %c0_i32_0 = arith.constant 0 : i32
    return %c0_i32, %arg1 : i32, i32
  }
  func.func @transform_2(%arg0: i32, %arg1: i32) -> (i32, i32) {
    %c0_i32 = arith.constant 0 : i32
    %c0_i32_0 = arith.constant 0 : i32
    return %c0_i32, %arg1 : i32, i32
  }
  func.func @transform_3(%arg0: i32, %arg1: i32) -> (i32, i32) {
    %c0_i32 = arith.constant 0 : i32
    return %arg0, %arg1 : i32, i32
  }
}

module attributes {stable_mosaic.version = 11 : i64} {
  func.func @_classifier_kernel(%arg0: memref<2x32xf32, #tpu.memory_space<vmem>>, %arg1: memref<32x32xf32, #tpu.memory_space<vmem>>, %arg2: memref<1x32xf32, #tpu.memory_space<vmem>>, %arg3: memref<32x16xf32, #tpu.memory_space<vmem>>, %arg4: memref<1x16xf32, #tpu.memory_space<vmem>>, %arg5: memref<16x3xf32, #tpu.memory_space<vmem>>, %arg6: memref<1x3xf32, #tpu.memory_space<vmem>>, %arg7: memref<2x3xf32, #tpu.memory_space<vmem>>) attributes {dimension_semantics = [], scalar_prefetch = 0 : i64, scratch_operands = 0 : i64, tpu.core_type = #tpu.core_type<tc>} {
    %c0 = arith.constant 0 : index
    %c0_0 = arith.constant 0 : index
    %0 = vector.load %arg0[%c0, %c0_0] : memref<2x32xf32, #tpu.memory_space<vmem>>, vector<2x32xf32>
    %c0_1 = arith.constant 0 : index
    %c0_2 = arith.constant 0 : index
    %1 = vector.load %arg1[%c0_1, %c0_2] : memref<32x32xf32, #tpu.memory_space<vmem>>, vector<32x32xf32>
    %cst = arith.constant dense<0.000000e+00> : vector<2x32xf32>
    %2 = tpu.matmul %0, %1, %cst {dimension_numbers = #tpu.dot_dimension_numbers<[1], [0], [0], [1], [0, 0, 1, 1], [], []>} : vector<2x32xf32>, vector<32x32xf32>, vector<2x32xf32> -> vector<2x32xf32>
    %c0_3 = arith.constant 0 : index
    %c0_4 = arith.constant 0 : index
    %3 = vector.load %arg2[%c0_3, %c0_4] : memref<1x32xf32, #tpu.memory_space<vmem>>, vector<1x32xf32>
    %4 = vector.broadcast %3 : vector<1x32xf32> to vector<2x32xf32>
    %5 = arith.addf %2, %4 : vector<2x32xf32>
    %cst_5 = arith.constant 0.000000e+00 : f32
    %6 = vector.broadcast %cst_5 : f32 to vector<2x32xf32>
    %7 = arith.maximumf %5, %6 : vector<2x32xf32>
    %c0_6 = arith.constant 0 : index
    %c0_7 = arith.constant 0 : index
    %8 = vector.load %arg3[%c0_6, %c0_7] : memref<32x16xf32, #tpu.memory_space<vmem>>, vector<32x16xf32>
    %cst_8 = arith.constant dense<0.000000e+00> : vector<2x16xf32>
    %9 = tpu.matmul %7, %8, %cst_8 {dimension_numbers = #tpu.dot_dimension_numbers<[1], [0], [0], [1], [0, 0, 1, 1], [], []>} : vector<2x32xf32>, vector<32x16xf32>, vector<2x16xf32> -> vector<2x16xf32>
    %c0_9 = arith.constant 0 : index
    %c0_10 = arith.constant 0 : index
    %10 = vector.load %arg4[%c0_9, %c0_10] : memref<1x16xf32, #tpu.memory_space<vmem>>, vector<1x16xf32>
    %11 = vector.broadcast %10 : vector<1x16xf32> to vector<2x16xf32>
    %12 = arith.addf %9, %11 : vector<2x16xf32>
    %cst_11 = arith.constant 0.000000e+00 : f32
    %13 = vector.broadcast %cst_11 : f32 to vector<2x16xf32>
    %14 = arith.maximumf %12, %13 : vector<2x16xf32>
    %c0_12 = arith.constant 0 : index
    %c0_13 = arith.constant 0 : index
    %15 = vector.load %arg5[%c0_12, %c0_13] : memref<16x3xf32, #tpu.memory_space<vmem>>, vector<16x3xf32>
    %cst_14 = arith.constant dense<0.000000e+00> : vector<2x3xf32>
    %16 = tpu.matmul %14, %15, %cst_14 {dimension_numbers = #tpu.dot_dimension_numbers<[1], [0], [0], [1], [0, 0, 1, 1], [], []>} : vector<2x16xf32>, vector<16x3xf32>, vector<2x3xf32> -> vector<2x3xf32>
    %c0_15 = arith.constant 0 : index
    %c0_16 = arith.constant 0 : index
    %17 = vector.load %arg6[%c0_15, %c0_16] : memref<1x3xf32, #tpu.memory_space<vmem>>, vector<1x3xf32>
    %18 = vector.broadcast %17 : vector<1x3xf32> to vector<2x3xf32>
    %19 = arith.addf %16, %18 : vector<2x3xf32>
    %c0_17 = arith.constant 0 : index
    %c0_18 = arith.constant 0 : index
    %20 = vector.load %arg7[%c0_17, %c0_18] : memref<2x3xf32, #tpu.memory_space<vmem>>, vector<2x3xf32>
    tpu.vector_store %arg7[%c0_17, %c0_18], %19 {strides = array<i32>} : memref<2x3xf32, #tpu.memory_space<vmem>>, vector<2x3xf32>,
    return
  }
}

</mosaic_0001>

<bundles_post_ra>
// kernel: bert_review_classifier_forward.14
= control target key start
LH: loop header
LB: loop body
LE: loop exit
PB: predicated region body
PF: predicated region fallthrough
CT: control target
= control target key end

     0   :  { %s488_s12 = smov 0   ;;  %s490_s13 = smov 0   ;;  %s530_s0 = inlined_call_operand.vmem [shape: bf16[16,32], index: 0, kind: input, shape index: {}]   ;;  %s531_s1 = inlined_call_operand.vmem [shape: bf16[32,96], index: 1, kind: input, shape index: {}]   ;;  %s532_s2 = inlined_call_operand.vmem [shape: f32[1,96], index: 2, kind: input, shape index: {}]   ;;  %s533_s3 = inlined_call_operand.vmem [shape: bf16[16,96], index: 3, kind: output, shape index: {}]  }
   0x1   :  { %s492_s14 = smov 0  }
   0x2 LB: > { %s25_s15 = sadd.s32 1, %s460_s13  ;;  %p394_p0 = scmp.ge.s32.totalorder %s464_s14, 1  ;;  %s464_s14 = sphi %s492_s14, %s13_s14   ;;  %s460_s13 = sphi %s490_s13, %s535_s13   ;;  %s456_s12 = sphi %s488_s12, %s534_s12  }
   0x3   : > { %p27_p1 = scmp.ge.s32.totalorder %s25_s15, 2  ;;  %p167_p2 = scmp.lt.s32.totalorder %s464_s14, 3 }
   0x5   : > { %s537_s15 = smov (%p27_p1, %s25_s15), 0  ;;  %p168_p3 = pnand %p394_p0, %p167_p2 }
   0x6   : > { %v440_v0 = vld [vmem:[%s531_s1] sm:$0xff] (!%p168_p3)   ;;  %v466_v1 = vmov (!%p168_p3), 0.0   ;;  %v441_v2 = vld [vmem:[%s531_s1 + $0x8] sm:$0xff] (!%p168_p3)   ;;  %vm467_vm0 = vmmov (!%p168_p3), 0   ;;  %p199_p4 = scmp.lt.s32.totalorder (!%p168_p3), %s456_s12, 1  ;;  %vm242_vm1 = vcmask (!%p168_p3), 261120  }
   0x7   : > { %171 = sbr.rel (%p168_p3) target bundleno = 235 (0xeb), region = 32  ;;  %406 = vmatprep.subr.bf16.mxu0 (!%p168_p3), %v466_v1  ;;  %410 = vmatprep.mubr.msk.bf16.mxu0 (!%p168_p3), %vm467_vm0, %v466_v1  ;;  %v397_v4 = vld [vmem:[%s532_s2] ss:$0 sm:$0xff] (!%p168_p3)  ;;  %vm287_vm2 = vcmask (!%p168_p3), 781312  }
   0x8   : > { %407 = vmatpush3.bf16.msra.mxu0 (!%p168_p3), %v440_v0 }
   0x9   : > { %408 = vmatprep.subr.bf16.mxu0 (!%p168_p3), %v466_v1 }
   0xc   : > { %409 = vmatpush3.bf16.msra.mxu0 (!%p168_p3), %v441_v2 }
   0xe   : > { %s539_s12 = smov (!%p199_p4, %s456_s12), 1 }
   0xf   : > { %s395_s20 = sshll.u32 %s539_s12, 2 }
  0x10   : > { %s202_s23 = scalar_lea.vmem %s530_s0, %s395_s20  ;;  %s216_s28 = scalar_lea.vmem %s533_s3, %s395_s20 }
  0x11   : > { %v218_v3 = vld [vmem:[%s202_s23] sm:$0xf] }
  0x12   : > { %411 = vmatmul.mubr.msk.bf16.vlgmr.msra.gmra.mrb[0].mxu0 %vm242_vm1, %v218_v3 }
  0xe5   : > { %v280_v5 = vpop.f32.mrb[0].mxu0 }
  0xe6   : > { %v281_v6 = vadd.f32 %v397_v4, %v280_v5  ;;  %v412_v7 = vpop.f32.mrb[1].mxu0 }
  0xe7   : > { %v283_v8 = vpop.f32.mrb[2].mxu0 }
  0xe8   : > { %v286_v9 = vpack.c.bf16 %v281_v6, %v281_v6  ;;  %v413_v10 = vpop.f32.mrb[3].mxu0 }
  0xea   : > { %288 = vst.msk [vmem:[%s216_s28] sm:$0xf] %vm287_vm2, %v286_v9 }
  0xeb PF: > { %s13_s14 = sadd.s32 1, %s464_s14   ;;  %s534_s12 = smov %s460_s13 }
  0xec   : > { %p10_p5 = scmp.ge.s32.totalorder %s13_s14, 4   ;;  %s535_s13 = smov %s537_s15 }
  0xee   :  { %12 = sbr.rel (!%p10_p5) target bundleno = 2 (0x2), region = 68 }

// kernel: bert_review_classifier_forward.13
= control target key start
LH: loop header
LB: loop body
LE: loop exit
PB: predicated region body
PF: predicated region fallthrough
CT: control target
= control target key end

     0   :  { %s590_s21 = smov 0   ;;  %s592_s22 = smov 0   ;;  %s645_s0 = inlined_call_operand.vmem [shape: f32[2,8,32], index: 0, kind: input, shape index: {}]   ;;  %s646_s1 = inlined_call_operand.vmem [shape: f32[8,32], index: 1, kind: input, shape index: {}]   ;;  %s647_s2 = inlined_call_operand.vmem [shape: f32[1,32], index: 2, kind: input, shape index: {}]   ;;  %s648_s3 = inlined_call_operand.vmem [shape: f32[1,32], index: 3, kind: input, shape index: {}]   ;;  %s649_s4 = inlined_call_operand.vmem [shape: f32[1,32], index: 4, kind: input, shape index: {}]   ;;  %s650_s5 = inlined_call_operand.vmem [shape: f32[2,8,32], index: 5, kind: output, shape index: {0}]   ;;  %s651_s6 = inlined_call_operand.vmem [shape: bf16[2,8,32], index: 6, kind: output, shape index: {1}]  }
   0x1   :  { %s594_s23 = smov 0  }
   0x2 LB: > { %s29_s24 = sadd.s32 1, %s549_s22  ;;  %p496_p0 = scmp.ge.s32.totalorder %s553_s23, 1  ;;  %s553_s23 = sphi %s594_s23, %s17_s23   ;;  %s549_s22 = sphi %s592_s22, %s653_s22   ;;  %s545_s21 = sphi %s590_s21, %s652_s21  }
   0x3   : > { %p31_p1 = scmp.ge.s32.totalorder %s29_s24, 2  ;;  %p244_p2 = scmp.lt.s32.totalorder %s553_s23, 3 }
   0x5   : > { %s655_s24 = smov (%p31_p1, %s29_s24), 0  ;;  %p245_p3 = pnand %p496_p0, %p244_p2 }
   0x6   : > { %p289_p4 = scmp.lt.s32.totalorder (!%p245_p3), %s545_s21, 1  ;;  %v315_v0 = vld [vmem:[%s646_s1] sm:$0xff] (!%p245_p3)  ;;  %vm327_vm0 = vcmask (!%p245_p3), 261120   ;;  %vm358_vm1 = vcmask (!%p245_p3), 257024  }
   0x7   : > { %248 = sbr.rel (%p245_p3) target bundleno = 338 (0x152), region = 40  ;;  %v500_v2 = vld [vmem:[%s647_s2] ss:$0 sm:$0xff] (!%p245_p3) }
   0x8   : > { %v501_v15 = vld [vmem:[%s648_s3] ss:$0 sm:$0xff] (!%p245_p3) }
   0x9   : > { %v502_v17 = vld [vmem:[%s649_s4] ss:$0 sm:$0xff] (!%p245_p3) }
   0xe   : > { %s657_s21 = smov (!%p289_p4, %s545_s21), 1 }
   0xf   : > { %s497_s25 = sshll.u32 %s657_s21, 3  ;;  %s499_s13 = sshll.u32 %s657_s21, 2 }
  0x10   : > { %s295_s30 = scalar_lea.vmem %s645_s0, %s497_s25  ;;  %s306_s16 = scalar_lea.vmem %s650_s5, %s497_s25 }
  0x11   : > { %v314_v1 = vld [vmem:[%s295_s30] sm:$0xff]  ;;  %s313_s19 = scalar_lea.vmem %s651_s6, %s499_s13 }
  0x12   : > { %v316_v3 = vadd.f32 %v315_v0, %v314_v1 }
  0x14   : > { %v324_v4 = vadd.f32 %v500_v2, %v316_v3 }
  0x16   : > { %v328_v5 = vsel %vm327_vm0, %v324_v4, 0.0 }
  0x17   : > { %329 = vadd.xlane.f32.xlu0 %v328_v5 }
  0xa4   : > { %v330_v6 = vpop.xlane.xlu0 %329 }
  0xa5   : > { %v332_v7 = vmul.f32 0.03125, %v330_v6 }
  0xa7   : > { %v333_v8 = vsub.f32 %v324_v4, %v332_v7 }
  0xa9   : > { %v334_v9 = vmul.f32 %v333_v8, %v333_v8 }
  0xab   : > { %v335_v10 = vsel %vm327_vm0, %v334_v9, 0.0 }
  0xac   : > { %336 = vadd.xlane.f32.xlu0 %v335_v10 }
 0x139   : > { %v337_v11 = vpop.xlane.xlu0 %336 }
 0x13a   : > { %v338_v12 = vmul.f32 0.03125, %v337_v11 }
 0x13c   : > { %v339_v13 = vadd.f32 1e-12, %v338_v12 }
 0x13e   : > { %529 = vrsqrt.f32 %v339_v13 }
 0x148   : > { %v530_v14 = vpop.eup %529 }
 0x149   : > { %v341_v16 = vmul.f32 %v530_v14, %v333_v8 }
 0x14b   : > { %v348_v18 = vmul.f32 %v501_v15, %v341_v16 }
 0x14d   : > { %v355_v19 = vadd.f32 %v502_v17, %v348_v18 }
 0x14f   : > { %356 = vst.msk [vmem:[%s306_s16] sm:$0xff] %vm327_vm0, %v355_v19  ;;  %v357_v20 = vpack.c.bf16 %v355_v19, %v355_v19 }
 0x151   : > { %359 = vst.msk [vmem:[%s313_s19] sm:$0xf] %vm358_vm1, %v357_v20 }
 0x152 PF: > { %s17_s23 = sadd.s32 1, %s553_s23   ;;  %s652_s21 = smov %s549_s22 }
 0x153   : > { %p14_p5 = scmp.ge.s32.totalorder %s17_s23, 4   ;;  %s653_s22 = smov %s655_s24 }
 0x155   :  { %16 = sbr.rel (!%p14_p5) target bundleno = 2 (0x2), region = 85 }

// kernel: bert_review_classifier_forward.15
= control target key start
LH: loop header
LB: loop body
LE: loop exit
PB: predicated region body
PF: predicated region fallthrough
CT: control target
= control target key end

     0   :  { %s559_s9 = smov 0   ;;  %s611_s0 = inlined_call_operand.vmem [shape: bf16[2,8,96], index: 0, kind: input, shape index: {}]   ;;  %s612_s1 = inlined_call_operand.vmem [shape: f32[2,1,8], index: 1, kind: input, shape index: {}]   ;;  %s613_s2 = inlined_call_operand.vmem [shape: bf16[2,8,32], index: 2, kind: output, shape index: {}]  }
   0x1 LB: > { %s456_s10 = sadd.s32 4294967295, %s534_s9   ;;  %p460_p0 = scmp.ge.s32.totalorder %s534_s9, 1  ;;  %s534_s9 = sphi %s559_s9, %s12_s9  }
   0x2   : > { %p119_p1 = scmp.lt.s32.totalorder %s534_s9, 3 }
   0x4   : > { %p120_p2 = pnand %p460_p0, %p119_p1 }
   0x5   : > { %p142_p3 = scmp.lt.s32.totalorder (!%p120_p2), %s456_s10, 1  ;;  %v536_v0 = vmov (!%p120_p2), 0.0   ;;  %vm537_vm0 = vmmov (!%p120_p2), 0   ;;  %s538_s15 = smov (!%p120_p2), 96   ;;  %vm167_vm1 = vcmask (!%p120_p2), 130048   ;;  %vm214_vm2 = vcmask (!%p120_p2), 64512  }
   0x6   : > { %123 = sbr.rel (%p120_p2) target bundleno = 1541 (0x605), region = 28  ;;  %479 = vmatprep.subr.bf16.mxu0 (!%p120_p2), %v536_v0  ;;  %481 = vmatprep.mubr.msk.bf16.mxu0 (!%p120_p2), %vm537_vm0, %v536_v0  ;;  %s539_s16 = smov (!%p120_p2), 64   ;;  %vm232_vm3 = vcmask (!%p120_p2), 1043456   ;;  %vm392_vm4 = vcmask (!%p120_p2), 257024  }
   0x7   : > { %485 = vmatprep.subr.bf16.mxu1 (!%p120_p2), %v536_v0  ;;  %487 = vmatprep.mubr.msk.bf16.mxu1 (!%p120_p2), %vm537_vm0, %v536_v0  ;;  %s540_s20 = smov (!%p120_p2), 80   ;;  %s541_s21 = smov (!%p120_p2), 112  }
   0x8   : > { %s542_s22 = smov (!%p120_p2), 48   ;;  %s543_s23 = smov (!%p120_p2), 16  }
   0xd   : > { %s615_s10 = smov (!%p142_p3, %s456_s10), 1 }
   0xe   : > { %s461_s11 = sshll.u32 %s615_s10, 2  ;;  %s148_s19 = scalar_lea.vmem %s612_s1, %s615_s10 }
   0xf   : > { %s145_s14 = scalar_lea.vmem %s611_s0, %s461_s11  ;;  %v463_v5 = vld [vmem:[%s148_s19] ss:$0 sm:$0xff]  ;;  %s152_s26 = scalar_lea.vmem %s613_s2, %s461_s11 }
  0x10   : > { %v154_v1 = vld [vmem:[%s145_s14] sm:$0xf] }
  0x11   : > { %v577_v2 = vcombine.low %v154_v1, %v154_v1 }
  0x13   : > { %165 = vrot.lane.b32.xlu0 %v577_v2, %s538_s15  ;;  %227 = vrot.lane.b32.xlu1 %v577_v2, %s539_s16 }
  0x85   : > { %v166_v3 = vpop.permute.xlu0 %165  ;;  %v228_v12 = vpop.permute.xlu1 %227 }
  0x86   : > { %v172_v4 = vsel %vm167_vm1, %v166_v3, 0  ;;  %v234_v13 = vsel %vm232_vm3, %v228_v12, 0 }
  0x87   : > { %480 = vmatpush3.bf16.xpose.msra.mxu0 %v172_v4  ;;  %486 = vmatpush3.bf16.msra.mxu1 %v234_v13 }
  0x88   : > { %497 = vmatprep.subr.bf16.mxu0 %v536_v0  ;;  %491 = vmatprep.subr.bf16.mxu1 %v536_v0 }
  0x8e   : > { %482 = vmatmul.mubr.msk.bf16.vlgmr.msra.gmra.mrb[0].mxu0 %vm167_vm1, %v154_v1 }
  0x8f   : > { %499 = vmatprep.mubr.msk.bf16.mxu0 %vm537_vm0, %v536_v0 }
 0x161   : > { %v208_v6 = vpop.f32.mrb[0].mxu0 }
 0x162   : > { %v209_v7 = vadd.f32 %v463_v5, %v208_v6  ;;  %v483_v8 = vpop.f32.mrb[1].mxu0 }
 0x163   : > { %v211_v9 = vpop.f32.mrb[2].mxu0 }
 0x164   : > { %v484_v10 = vpop.f32.mrb[3].mxu0  ;;  %v215_v11 = vsel %vm214_vm2, %v209_v7, -inf }
 0x165   : > { %216 = vmax.xlane.f32.xlu0 %v215_v11 }
 0x1f2   : > { %v217_v14 = vpop.xlane.xlu0 %216 }
 0x1f3   : > { %v218_v15 = vsub.f32 %v209_v7, %v217_v14 }
 0x1f5   : > { %v219_v16 = vmul.f32 1.442695, %v218_v15 }
 0x1f7   : > { %520 = vpow2.f32 %v219_v16 }
 0x201   : > { %v521_v17 = vpop.eup %520 }
 0x202   : > { %v221_v18 = vsel %vm214_vm2, %v521_v17, 0.0 }
 0x203   : > { %222 = vadd.xlane.f32.xlu1 %v221_v18 }
 0x214   : > { %278 = vrot.lane.b32.xlu1 %v577_v2, %s540_s20 }
 0x218   : > { %276 = vrot.lane.b32.xlu1 %v577_v2, %s541_s21 }
 0x290   : > { %v223_v19 = vpop.xlane.xlu1 %222 }
 0x291   : > { %522 = vrcp.f32 %v223_v19 }
 0x294   : > { %v279_v21 = vpop.permute.xlu1 %278 }
 0x295   : > { %v284_v23 = vsel %vm167_vm1, %v279_v21, 0 }
 0x298   : > { %v277_v25 = vpop.permute.xlu1 %276 }
 0x29b   : > { %v523_v20 = vpop.eup %522 }
 0x29c   : > { %v225_v22 = vmul.f32 %v523_v20, %v521_v17 }
 0x29e   : > { %v226_v24 = vpack.c.bf16 %v225_v22, %v225_v22 }
 0x2a0   : > { %488 = vmatmul.mubr.msk.bf16.vlgmr.msra.gmra.mrb[0].mxu1 %vm214_vm2, %v226_v24 }
 0x2a1   : > { %492 = vmatpush3.bf16.xpose.msra.mxu1 %v284_v23  ;;  %493 = vmatprep.mubr.msk.bf16.mxu1 %vm537_vm0, %v536_v0 }
 0x2a8   : > { %494 = vmatmul.mubr.msk.bf16.vlgmr.msra.gmra.mrb[4].mxu1 %vm167_vm1, %v277_v25 }
 0x373   : > { %v270_v26 = vpop.f32.mrb[0].mxu1 }
 0x374   : > { %v489_v27 = vpop.f32.mrb[1].mxu1 }
 0x375   : > { %v273_v28 = vpop.f32.mrb[2].mxu1 }
 0x376   : > { %v490_v29 = vpop.f32.mrb[3].mxu1 }
 0x37b   : > { %v320_v30 = vpop.f32.mrb[4].mxu1 }
 0x37c   : > { %v321_v31 = vadd.f32 %v463_v5, %v320_v30  ;;  %v495_v32 = vpop.f32.mrb[5].mxu1 }
 0x37d   : > { %v323_v33 = vpop.f32.mrb[6].mxu1 }
 0x37e   : > { %v496_v34 = vpop.f32.mrb[7].mxu1  ;;  %v326_v35 = vsel %vm214_vm2, %v321_v31, -inf }
 0x37f   : > { %327 = vmax.xlane.f32.xlu1 %v326_v35 }
 0x40c   : > { %v328_v36 = vpop.xlane.xlu1 %327 }
 0x40d   : > { %v329_v37 = vsub.f32 %v321_v31, %v328_v36 }
 0x40f   : > { %v330_v38 = vmul.f32 1.442695, %v329_v37 }
 0x411   : > { %524 = vpow2.f32 %v330_v38 }
 0x41b   : > { %v525_v39 = vpop.eup %524 }
 0x41c   : > { %v332_v40 = vsel %vm214_vm2, %v525_v39, 0.0 }
 0x41d   : > { %333 = vadd.xlane.f32.xlu0 %v332_v40 }
 0x433   : > { %338 = vrot.lane.b32.xlu0 %v577_v2, %s542_s22 }
 0x4aa   : > { %v334_v41 = vpop.xlane.xlu0 %333 }
 0x4ab   : > { %526 = vrcp.f32 %v334_v41 }
 0x4ae   : > { %v339_v42 = vpop.permute.xlu0 %338 }
 0x4af   : > { %v344_v43 = vsel %vm232_vm3, %v339_v42, 0 }
 0x4b0   : > { %498 = vmatpush3.bf16.msra.mxu0 %v344_v43 }
 0x4b5   : > { %v527_v44 = vpop.eup %526 }
 0x4b6   : > { %v336_v45 = vmul.f32 %v527_v44, %v525_v39 }
 0x4b8   : > { %v337_v46 = vpack.c.bf16 %v336_v45, %v336_v45 }
 0x4ba   : > { %500 = vmatmul.mubr.msk.bf16.vlgmr.msra.gmra.mrb[4].mxu0 %vm214_vm2, %v337_v46 }
 0x58d   : > { %v380_v47 = vpop.f32.mrb[4].mxu0 }
 0x58e   : > { %387 = vrot.lane.b32.xlu0 %v380_v47, %s543_s23  ;;  %v501_v48 = vpop.f32.mrb[5].mxu0 }
 0x58f   : > { %v383_v49 = vpop.f32.mrb[6].mxu0 }
 0x590   : > { %v502_v50 = vpop.f32.mrb[7].mxu0 }
 0x600   : > { %v388_v51 = vpop.permute.xlu0 %387 }
 0x601   : > { %v390_v52 = vsel %vm167_vm1, %v270_v26, %v388_v51 }
 0x602   : > { %v391_v53 = vpack.c.bf16 %v390_v52, %v390_v52 }
 0x604   : > { %393 = vst.msk [vmem:[%s152_s26] sm:$0xf] %vm392_vm4, %v391_v53 }
 0x605 PF: > { %s12_s9 = sadd.s32 1, %s534_s9  }
 0x606   : > { %p9_p4 = scmp.ge.s32.totalorder %s12_s9, 4  }
 0x608   :  { %11 = sbr.rel (!%p9_p4) target bundleno = 1 (0x1), region = 61 }

// kernel: bert_review_classifier_forward.16
= control target key start
LH: loop header
LB: loop body
LE: loop exit
PB: predicated region body
PF: predicated region fallthrough
CT: control target
= control target key end

     0   :  { %s595_s24 = smov 0   ;;  %s645_s0 = inlined_call_operand.vmem [shape: bf16[16,32], index: 0, kind: input, shape index: {}]   ;;  %s646_s1 = inlined_call_operand.vmem [shape: bf16[32,32], index: 1, kind: input, shape index: {}]   ;;  %s647_s2 = inlined_call_operand.vmem [shape: f32[1,32], index: 2, kind: input, shape index: {}]   ;;  %s648_s3 = inlined_call_operand.vmem [shape: f32[16,32], index: 3, kind: input, shape index: {}]   ;;  %s649_s4 = inlined_call_operand.vmem [shape: f32[1,32], index: 4, kind: input, shape index: {}]   ;;  %s650_s5 = inlined_call_operand.vmem [shape: f32[1,32], index: 5, kind: input, shape index: {}]   ;;  %s651_s6 = inlined_call_operand.vmem [shape: f32[16,32], index: 6, kind: output, shape index: {0}]   ;;  %s652_s7 = inlined_call_operand.vmem [shape: bf16[16,32], index: 7, kind: output, shape index: {1}]  }
   0x1 LB: > { %s503_s25 = sadd.s32 4294967295, %s551_s24   ;;  %p507_p0 = scmp.ge.s32.totalorder %s551_s24, 1  ;;  %s551_s24 = sphi %s595_s24, %s18_s24  }
   0x2   : > { %p248_p1 = scmp.lt.s32.totalorder %s551_s24, 3 }
   0x4   : > { %p249_p2 = pnand %p507_p0, %p248_p1 }
   0x5   : > { %v541_v0 = vld [vmem:[%s646_s1] sm:$0xff] (!%p249_p2)   ;;  %v553_v1 = vmov (!%p249_p2), 0.0   ;;  %v542_v2 = vld [vmem:[%s646_s1 + $0x8] sm:$0xff] (!%p249_p2)   ;;  %vm554_vm0 = vmmov (!%p249_p2), 0   ;;  %p286_p3 = scmp.lt.s32.totalorder (!%p249_p2), %s503_s25, 1  ;;  %vm327_vm1 = vcmask (!%p249_p2), 261120  }
   0x6   : > { %252 = sbr.rel (%p249_p2) target bundleno = 549 (0x225), region = 44  ;;  %523 = vmatprep.subr.bf16.mxu0 (!%p249_p2), %v553_v1  ;;  %527 = vmatprep.mubr.msk.bf16.mxu0 (!%p249_p2), %vm554_vm0, %v553_v1  ;;  %v512_v4 = vld [vmem:[%s647_s2] ss:$0 sm:$0xff] (!%p249_p2)  ;;  %vm405_vm2 = vcmask (!%p249_p2), 257024  }
   0x7   : > { %524 = vmatpush3.bf16.msra.mxu0 (!%p249_p2), %v541_v0  ;;  %v516_v22 = vld [vmem:[%s649_s4] ss:$0 sm:$0xff] (!%p249_p2) }
   0x8   : > { %525 = vmatprep.subr.bf16.mxu0 (!%p249_p2), %v553_v1  ;;  %v517_v24 = vld [vmem:[%s650_s5] ss:$0 sm:$0xff] (!%p249_p2) }
   0xb   : > { %526 = vmatpush3.bf16.msra.mxu0 (!%p249_p2), %v542_v2 }
   0xd   : > { %s654_s25 = smov (!%p286_p3, %s503_s25), 1 }
   0xe   : > { %s508_s30 = sshll.u32 %s654_s25, 2  ;;  %s509_s11 = sshll.u32 %s654_s25, 3 }
   0xf   : > { %s289_s10 = scalar_lea.vmem %s645_s0, %s508_s30  ;;  %s293_s14 = scalar_lea.vmem %s648_s3, %s509_s11 }
  0x10   : > { %v303_v3 = vld [vmem:[%s289_s10] sm:$0xf]  ;;  %s297_s23 = scalar_lea.vmem %s651_s6, %s509_s11  ;;  %s301_s28 = scalar_lea.vmem %s652_s7, %s508_s30 }
  0x11   : > { %528 = vmatmul.mubr.msk.bf16.vlgmr.msra.gmra.mrb[0].mxu0 %vm327_vm1, %v303_v3  ;;  %v371_v6 = vld [vmem:[%s293_s14] sm:$0xff] }
  0xe4   : > { %v365_v5 = vpop.f32.mrb[0].mxu0 }
  0xe5   : > { %v366_v7 = vadd.f32 %v512_v4, %v365_v5  ;;  %v529_v8 = vpop.f32.mrb[1].mxu0 }
  0xe6   : > { %v368_v9 = vpop.f32.mrb[2].mxu0 }
  0xe7   : > { %v530_v10 = vpop.f32.mrb[3].mxu0  ;;  %v372_v11 = vadd.f32 %v371_v6, %v366_v7 }
  0xe9   : > { %v375_v12 = vsel %vm327_vm1, %v372_v11, 0.0 }
  0xea   : > { %376 = vadd.xlane.f32.xlu0 %v375_v12 }
 0x177   : > { %v377_v13 = vpop.xlane.xlu0 %376 }
 0x178   : > { %v379_v14 = vmul.f32 0.03125, %v377_v13 }
 0x17a   : > { %v380_v15 = vsub.f32 %v372_v11, %v379_v14 }
 0x17c   : > { %v381_v16 = vmul.f32 %v380_v15, %v380_v15 }
 0x17e   : > { %v382_v17 = vsel %vm327_vm1, %v381_v16, 0.0 }
 0x17f   : > { %383 = vadd.xlane.f32.xlu0 %v382_v17 }
 0x20c   : > { %v384_v18 = vpop.xlane.xlu0 %383 }
 0x20d   : > { %v385_v19 = vmul.f32 0.03125, %v384_v18 }
 0x20f   : > { %v386_v20 = vadd.f32 1e-12, %v385_v19 }
 0x211   : > { %543 = vrsqrt.f32 %v386_v20 }
 0x21b   : > { %v544_v21 = vpop.eup %543 }
 0x21c   : > { %v388_v23 = vmul.f32 %v544_v21, %v380_v15 }
 0x21e   : > { %v395_v25 = vmul.f32 %v516_v22, %v388_v23 }
 0x220   : > { %v402_v26 = vadd.f32 %v517_v24, %v395_v25 }
 0x222   : > { %403 = vst.msk [vmem:[%s297_s23] sm:$0xff] %vm327_vm1, %v402_v26  ;;  %v404_v27 = vpack.c.bf16 %v402_v26, %v402_v26 }
 0x224   : > { %406 = vst.msk [vmem:[%s301_s28] sm:$0xf] %vm405_vm2, %v404_v27 }
 0x225 PF: > { %s18_s24 = sadd.s32 1, %s551_s24  }
 0x226   : > { %p15_p4 = scmp.ge.s32.totalorder %s18_s24, 4  }
 0x228   :  { %17 = sbr.rel (!%p15_p4) target bundleno = 1 (0x1), region = 89 }

// kernel: bert_review_classifier_forward.17
= control target key start
LH: loop header
LB: loop body
LE: loop exit
PB: predicated region body
PF: predicated region fallthrough
CT: control target
= control target key end

     0   :  { %s499_s12 = smov 0   ;;  %s501_s13 = smov 0   ;;  %s541_s0 = inlined_call_operand.vmem [shape: bf16[16,32], index: 0, kind: input, shape index: {}]   ;;  %s542_s1 = inlined_call_operand.vmem [shape: bf16[32,64], index: 1, kind: input, shape index: {}]   ;;  %s543_s2 = inlined_call_operand.vmem [shape: f32[1,64], index: 2, kind: input, shape index: {}]   ;;  %s544_s3 = inlined_call_operand.vmem [shape: bf16[16,64], index: 3, kind: output, shape index: {}]  }
   0x1   :  { %s503_s14 = smov 0  }
   0x2 LB: > { %s25_s15 = sadd.s32 1, %s471_s13  ;;  %p403_p0 = scmp.ge.s32.totalorder %s475_s14, 1  ;;  %s475_s14 = sphi %s503_s14, %s13_s14   ;;  %s471_s13 = sphi %s501_s13, %s546_s13   ;;  %s467_s12 = sphi %s499_s12, %s545_s12  }
   0x3   : > { %p27_p1 = scmp.ge.s32.totalorder %s25_s15, 2  ;;  %p167_p2 = scmp.lt.s32.totalorder %s475_s14, 3 }
   0x5   : > { %s548_s15 = smov (%p27_p1, %s25_s15), 0  ;;  %p168_p3 = pnand %p403_p0, %p167_p2 }
   0x6   : > { %v449_v0 = vld [vmem:[%s542_s1] sm:$0xff] (!%p168_p3)   ;;  %v477_v1 = vmov (!%p168_p3), 0.0   ;;  %v450_v2 = vld [vmem:[%s542_s1 + $0x8] sm:$0xff] (!%p168_p3)   ;;  %vm478_vm0 = vmmov (!%p168_p3), 0   ;;  %p199_p4 = scmp.lt.s32.totalorder (!%p168_p3), %s467_s12, 1  ;;  %vm242_vm1 = vcmask (!%p168_p3), 261120  }
   0x7   : > { %171 = sbr.rel (%p168_p3) target bundleno = 260 (0x104), region = 32  ;;  %415 = vmatprep.subr.bf16.mxu0 (!%p168_p3), %v477_v1  ;;  %419 = vmatprep.mubr.msk.bf16.mxu0 (!%p168_p3), %vm478_vm0, %v477_v1  ;;  %v406_v4 = vld [vmem:[%s543_s2] ss:$0 sm:$0xff] (!%p168_p3)  ;;  %vm296_vm2 = vcmask (!%p168_p3), 519168  }
   0x8   : > { %416 = vmatpush3.bf16.msra.mxu0 (!%p168_p3), %v449_v0 }
   0x9   : > { %417 = vmatprep.subr.bf16.mxu0 (!%p168_p3), %v477_v1 }
   0xc   : > { %418 = vmatpush3.bf16.msra.mxu0 (!%p168_p3), %v450_v2 }
   0xe   : > { %s550_s12 = smov (!%p199_p4, %s467_s12), 1 }
   0xf   : > { %s404_s20 = sshll.u32 %s550_s12, 2 }
  0x10   : > { %s202_s23 = scalar_lea.vmem %s541_s0, %s404_s20  ;;  %s216_s28 = scalar_lea.vmem %s544_s3, %s404_s20 }
  0x11   : > { %v218_v3 = vld [vmem:[%s202_s23] sm:$0xf] }
  0x12   : > { %420 = vmatmul.mubr.msk.bf16.vlgmr.msra.gmra.mrb[0].mxu0 %vm242_vm1, %v218_v3 }
  0xe5   : > { %v280_v5 = vpop.f32.mrb[0].mxu0 }
  0xe6   : > { %v281_v6 = vadd.f32 %v406_v4, %v280_v5  ;;  %v421_v7 = vpop.f32.mrb[1].mxu0 }
  0xe7   : > { %v283_v8 = vpop.f32.mrb[2].mxu0 }
  0xe8   : > { %v287_v9 = vmul.f32 0.044715, %v281_v6  ;;  %v422_v10 = vpop.f32.mrb[3].mxu0  ;;  %v286_v16 = vmul.f32 0.5, %v281_v6 }
  0xea   : > { %v288_v11 = vmul.f32 %v287_v9, %v281_v6 }
  0xec   : > { %v289_v12 = vmul.f32 %v288_v11, %v281_v6 }
  0xee   : > { %v290_v13 = vadd.f32 %v289_v12, %v281_v6 }
  0xf0   : > { %v291_v14 = vmul.f32 0.7978846, %v290_v13 }
  0xf2   : > { %451 = vtanh.f32 %v291_v14 }
  0xfc   : > { %v452_v15 = vpop.eup %451 }
  0xfd   : > { %v293_v17 = vadd.f32 1.0, %v452_v15 }
  0xff   : > { %v294_v18 = vmul.f32 %v293_v17, %v286_v16 }
 0x101   : > { %v295_v19 = vpack.c.bf16 %v294_v18, %v294_v18 }
 0x103   : > { %297 = vst.msk [vmem:[%s216_s28] sm:$0xf] %vm296_vm2, %v295_v19 }
 0x104 PF: > { %s13_s14 = sadd.s32 1, %s475_s14   ;;  %s545_s12 = smov %s471_s13 }
 0x105   : > { %p10_p5 = scmp.ge.s32.totalorder %s13_s14, 4   ;;  %s546_s13 = smov %s548_s15 }
 0x107   :  { %12 = sbr.rel (!%p10_p5) target bundleno = 2 (0x2), region = 68 }

// kernel: bert_review_classifier_forward.24
= control target key start
LH: loop header
LB: loop body
LE: loop exit
PB: predicated region body
PF: predicated region fallthrough
CT: control target
= control target key end

     0   :  { %v111_v0 = vmov 0.0   ;;  %vm112_vm0 = vmmov 0   ;;  %vm39_vm1 = vcmask 261120   ;;  %vm84_vm2 = vcmask 254976   ;;  %s148_s1 = inlined_call_operand.vmem [shape: bf16[32,32], index: 1, kind: input, shape index: {}]   ;;  %s149_s0 = inlined_call_operand.vmem [shape: bf16[2,32], index: 0, kind: input, shape index: {}]   ;;  %s150_s2 = inlined_call_operand.vmem [shape: f32[1,32], index: 2, kind: input, shape index: {}]   ;;  %s151_s3 = inlined_call_operand.vmem [shape: f32[2,32], index: 3, kind: output, shape index: {}]  }
   0x1   :  { %97 = vmatprep.subr.bf16.mxu0 %v111_v0  ;;  %v107_v1 = vld [vmem:[%s148_s1] sm:$0xff]   ;;  %101 = vmatprep.mubr.msk.bf16.mxu0 %vm112_vm0, %v111_v0  ;;  %v108_v2 = vld [vmem:[%s148_s1 + $0x8] sm:$0xff]  }
   0x2   :  { %98 = vmatpush3.bf16.msra.mxu0 %v107_v1  ;;  %v15_v3 = vld [vmem:[%s149_s0] sm:$0x1] }
   0x3   :  { %99 = vmatprep.subr.bf16.mxu0 %v111_v0  ;;  %v90_v4 = vld [vmem:[%s150_s2] ss:$0 sm:$0xff] }
   0x6   :  { %100 = vmatpush3.bf16.msra.mxu0 %v108_v2 }
   0x9   :  { %102 = vmatmul.mubr.msk.bf16.vlgmr.msra.gmra.mrb[0].mxu0 %vm39_vm1, %v15_v3 }
  0xdc   :  { %v77_v5 = vpop.f32.mrb[0].mxu0 }
  0xdd   :  { %v78_v6 = vadd.f32 %v90_v4, %v77_v5  ;;  %v103_v7 = vpop.f32.mrb[1].mxu0 }
  0xde   :  { %v80_v8 = vpop.f32.mrb[2].mxu0 }
  0xdf   :  { %109 = vtanh.f32 %v78_v6  ;;  %v104_v9 = vpop.f32.mrb[3].mxu0 }
  0xe9   :  { %v110_v10 = vpop.eup %109 }
  0xea   :  { %85 = vst.msk [vmem:[%s151_s3] sm:$0x3] %vm84_vm2, %v110_v10 }

// kernel: bert_review_classifier_forward.23
= control target key start
LH: loop header
LB: loop body
LE: loop exit
PB: predicated region body
PF: predicated region fallthrough
CT: control target
= control target key end

     0   :  { %13 = vsyncpa [#allocation3], 0  ;;  %s873_s0 = inlined_call_operand.vmem [shape: bf16[16,64], index: 0, kind: input, shape index: {}]   ;;  %s874_s1 = inlined_call_operand.vmem [shape: bf16[64,32], index: 1, kind: input, shape index: {}]   ;;  %s875_s2 = inlined_call_operand.vmem [shape: f32[1,32], index: 2, kind: input, shape index: {}]   ;;  %s876_s3 = inlined_call_operand.vmem [shape: f32[16,32], index: 3, kind: input, shape index: {}]   ;;  %s877_s4 = inlined_call_operand.vmem [shape: f32[1,32], index: 4, kind: input, shape index: {}]   ;;  %s878_s5 = inlined_call_operand.vmem [shape: f32[1,32], index: 5, kind: input, shape index: {}]   ;;  %s879_s6 = inlined_call_operand.hbm [shape: f32[16,32], index: 6, kind: output, shape index: {0}]   ;;  %s880_s7 = inlined_call_operand.vmem [shape: bf16[16,32], index: 7, kind: output, shape index: {1}]  }
   0x1   :  { %15 = vsyncpa [#allocation3 + $0x1], 0  ;;  %s731_s24 = smov 0   ;;  %s733_s25 = smov 0  }
   0x2   :  { %s735_s26 = smov 0   ;;  %s737_s27 = smov 0  }
   0x3 LB: > { %s752_s28 = sadd.s32 4294967295, %s686_s27   ;;  %s540_s29 = sadd.s32 4294967294, %s686_s27   ;;  %s686_s27 = sphi %s737_s27, %s886_s27   ;;  %s682_s26 = sphi %s735_s26, %s885_s26   ;;  %s678_s25 = sphi %s733_s25, %s884_s25   ;;  %s674_s24 = sphi %s731_s24, %s883_s24  }
   0x4   : > { %s756_s30 = sadd.s32 1, %s686_s27   ;;  %s164_s8 = sadd.s32 1, %s682_s26 }
   0x5   : > { %s161_s9 = ssub.s32 %s686_s27, %s756_s30  ;;  %p174_p0 = scmp.ne.s32.totalorder %s682_s26, %s678_s25 }
   0x6   : > { %p162_p1 = scmp.eq.s32.totalorder %s161_s9, 0  ;;  %p175_p2 = scmp.eq.s32.totalorder %s752_s28, 1 }
   0x7   : > { %p180_p3 = scmp.ne.s32.totalorder %s678_s25, %s674_s24  ;;  %p181_p4 = scmp.eq.s32.totalorder %s540_s29, 1 }
   0x8   : > { %s767_s10 = scalar_select %p162_p1, %s682_s26, %s164_s8  }
   0x9   : > { %p769_p5 = por %p175_p2, %p174_p0  ;;  %p773_p6 = por %p181_p4, %p180_p3 }
   0xa   : > { %p543_p7 = scmp.ge.s32.totalorder %s686_s27, 1  ;;  %p251_p8 = scmp.lt.s32.totalorder %s686_s27, 3 }
   0xc   : > { %p252_p9 = pnand %p543_p7, %p251_p8 }
   0xd   : > { %v618_v0 = vld [vmem:[%s874_s1] sm:$0xff] (!%p252_p9)   ;;  %v688_v1 = vmov (!%p252_p9), 0.0   ;;  %v619_v2 = vld [vmem:[%s874_s1 + $0x8] sm:$0xff] (!%p252_p9)   ;;  %vm689_vm0 = vmmov (!%p252_p9), 0   ;;  %p290_p10 = scmp.lt.s32.totalorder (!%p252_p9), %s752_s28, 1  ;;  %v620_v3 = vld [vmem:[%s874_s1 + $0x10] sm:$0xff] (!%p252_p9)  }
   0xe   : > { %255 = sbr.rel (%p252_p9) target bundleno = 573 (0x23d), region = 44  ;;  %565 = vmatprep.subr.bf16.mxu0 (!%p252_p9), %v688_v1  ;;  %573 = vmatprep.mubr.msk.bf16.mxu0 (!%p252_p9), %vm689_vm0, %v688_v1  ;;  %v621_v4 = vld [vmem:[%s874_s1 + $0x18] sm:$0xff] (!%p252_p9)   ;;  %vm343_vm1 = vcmask (!%p252_p9), 523264   ;;  %v548_v6 = vld [vmem:[%s875_s2] ss:$0 sm:$0xff] (!%p252_p9)  ;;  %vm391_vm2 = vcmask (!%p252_p9), 261120  }
   0xf   : > { %566 = vmatpush3.bf16.msra.mxu0 (!%p252_p9), %v618_v0  ;;  %s281_s19 = sand.u32 (!%p252_p9), 1, %s678_s25   ;;  %v554_v24 = vld [vmem:[%s877_s4] ss:$0 sm:$0xff] (!%p252_p9)  ;;  %vm422_vm3 = vcmask (!%p252_p9), 257024  }
  0x10   : > { %567 = vmatprep.subr.bf16.mxu0 (!%p252_p9), %v688_v1  ;;  %s544_s21 = sshll.u32 (!%p252_p9), %s281_s19, 3  ;;  %v555_v26 = vld [vmem:[%s878_s5] ss:$0 sm:$0xff] (!%p252_p9) }
  0x11   : > { %s283_s13 = scalar_lea.vmem (!%p252_p9), [#allocation2], %s544_s21 }
  0x12   : > { %s442_s14 = sshll.u32 (!%p252_p9), %s283_s13, 4  ;;  %s823_s14 = int_to_ptr.vmem [resolvable:$true] %s442_s14 }
  0x13   : > { %568 = vmatpush3.bf16.msra.mxu0 (!%p252_p9), %v619_v2  ;;  %s624_s21 = scalar_lea.vmem (!%p252_p9), %s823_s14, 128 }
  0x14   : > { %569 = vmatprep.subr.bf16.mxu0 (!%p252_p9), %v688_v1  ;;  %p625_p11 = scmp.ne.s32.totalorder (!%p252_p9), %s823_s14, %s624_s21 }
  0x15   : > { %s787_s17 = scalar_select %p290_p10, %s752_s28, 1 }
  0x16   : > { %p626_p12 = pnand %p625_p11, %p769_p5 }
  0x17   : > { %s545_s20 = sshll.u32 %s787_s17, 2  ;;  %570 = vmatpush3.bf16.msra.mxu0 %v620_v3  ;;  %s546_s9 = sshll.u32 %s787_s17, 3 }
  0x18   : > { %571 = vmatprep.subr.bf16.mxu0 %v688_v1  ;;  %s293_s8 = scalar_lea.vmem %s873_s0, %s545_s20  ;;  %s297_s15 = scalar_lea.vmem %s876_s3, %s546_s9 }
  0x19   : > { %v303_v5 = vld [vmem:[%s293_s8] sm:$0xf]  ;;  %s557_s9 = sshll.u32 %s752_s28, 7  ;;  %s830_s29 = scalar_lea.vmem %s880_s7, %s545_s20 }
  0x1a   : > { %v387_v8 = vld [vmem:[%s297_s15] sm:$0xff]  ;;  %s821_s18 = scalar_lea.hbm %s879_s6, %s557_s9  ;;  %s425_s28 = scalar_lea.sflag [#allocation3], %s281_s19 }
  0x1b   : > { %572 = vmatpush3.bf16.msra.mxu0 %v621_v4  ;;  %p627_p13 = pneg %p626_p12  ;;  %s690_s8 = smov [#allocation2]  }
  0x1c   : > { %s628_s17 = sshll.u32 %s690_s8, 4  ;;  %s629_s17 = int_to_ptr.vmem [resolvable:$false] %s628_s17 }
  0x1d   : > { %s630_s9 = scalar_lea.vmem %s629_s17, 256  ;;  %p631_p0 = scmp.lt.s32.totalorder %s823_s14, %s629_s17 }
  0x1e   : > { %574 = vmatmul.mubr.msk.bf16.vlgmr.msra.gmra.mrb[0].mxu0 %vm343_vm1, %v303_v5  ;;  %p632_p1 = scmp.lt.s32.totalorder %s630_s9, %s624_s21 }
  0x20   : > { %p633_p2 = por %p632_p1, %p631_p0 }
  0x22   : > { %p634_p3 = pnand %p633_p2, %p627_p13 }
  0xf1   : > { %v381_v7 = vpop.f32.mrb[0].mxu0 }
  0xf2   : > { %v382_v9 = vadd.f32 %v548_v6, %v381_v7  ;;  %v575_v10 = vpop.f32.mrb[1].mxu0 }
  0xf3   : > { %v384_v11 = vpop.f32.mrb[2].mxu0 }
  0xf4   : > { %v576_v12 = vpop.f32.mrb[3].mxu0  ;;  %v388_v13 = vadd.f32 %v387_v8, %v382_v9 }
  0xf6   : > { %v392_v14 = vsel %vm391_vm2, %v388_v13, 0.0 }
  0xf7   : > { %393 = vadd.xlane.f32.xlu0 %v392_v14 }
 0x184   : > { %v394_v15 = vpop.xlane.xlu0 %393 }
 0x185   : > { %v396_v16 = vmul.f32 0.03125, %v394_v15 }
 0x187   : > { %v397_v17 = vsub.f32 %v388_v13, %v396_v16 }
 0x189   : > { %v398_v18 = vmul.f32 %v397_v17, %v397_v17 }
 0x18b   : > { %v399_v19 = vsel %vm391_vm2, %v398_v18, 0.0 }
 0x18c   : > { %400 = vadd.xlane.f32.xlu0 %v399_v19 }
 0x219   : > { %v401_v20 = vpop.xlane.xlu0 %400 }
 0x21a   : > { %v402_v21 = vmul.f32 0.03125, %v401_v20 }
 0x21c   : > { %v403_v22 = vadd.f32 1e-12, %v402_v21 }
 0x21e   : > { %622 = vrsqrt.f32 %v403_v22 }
 0x228   : > { %v623_v23 = vpop.eup %622 }
 0x229   : > { %v405_v25 = vmul.f32 %v623_v23, %v397_v17 }
 0x22b   : > { %v412_v27 = vmul.f32 %v554_v24, %v405_v25 }
 0x22d   : > { %v419_v28 = vadd.f32 %v555_v26, %v412_v27 }
 0x22f   : > { %420 = vst.msk [vmem:[%s283_s13] sm:$0xff] %vm391_vm2, %v419_v28  ;;  %v421_v29 = vpack.c.bf16 %v419_v28, %v419_v28 }
 0x230   : > { %637 = shalt.err (!%p634_p3)
}
 0x231   : > { %s638_s20 = scalar_lea.hbm %s821_s18, 128  ;;  %s642_s15 = scalar_lea.hbm %s879_s6, 256 }
 0x232   : > { %p639_p4 = scmp.ne.s32.totalorder %s821_s18, %s638_s20  ;;  %p643_p9 = scmp.lt.u32.totalorder %s821_s18, %s879_s6 }
 0x233   : > { %p644_p10 = scmp.lt.u32.totalorder %s642_s15, %s638_s20  ;;  %p646_p12 = scmp.lt.u32.totalorder %s638_s20, %s821_s18 }
 0x234   : > { %p640_p7 = pnand %p639_p4, %p769_p5 }
 0x235   : > { %p645_p11 = por %p644_p10, %p643_p9 }
 0x236   : > { %p641_p8 = pneg %p640_p7 }
 0x237   : > { %p647_p13 = por %p646_p12, %p645_p11 }
 0x239   : > { %p648_p0 = pnand %p647_p13, %p641_p8 }
 0x23b   : > { %651 = shalt.err (!%p648_p0)
}
 0x23c   : > { %577 = dma.vmem_to_hbm [thread:$0]  (%p769_p5), %s823_s14, 128, %s821_s18, %s425_s28   ;;  %423 = vst.msk [vmem:[%s830_s29] sm:$0xf] %vm422_vm3, %v421_v29 }
 0x23d PF: > { %p583_p1 = scmp.ge.s32.totalorder %s686_s27, 2  ;;  %s457_s23 = sand.u32 1, %s674_s24  }
 0x23e   : > { %s458_s21 = scalar_lea.sflag [#allocation3], %s457_s23 }
 0x23f   : > { %p580_p2 = pnand %p583_p1, %p773_p6 }
 0x241   : > { %669 = dma.done.wait (!%p580_p2), %s458_s21, 128  }
 0x242   : > { %671 = vsyncadd (!%p580_p2), %s458_s21, 4294967168  ;;  %p18_p3 = scmp.ge.s32.totalorder %s756_s30, 4   ;;  %s883_s24 = smov %s678_s25 }
 0x243   : > { %s884_s25 = smov %s682_s26  ;;  %s885_s26 = smov %s767_s10 }
 0x244   : > { %s886_s27 = smov %s756_s30  ;;  %20 = sbr.rel (!%p18_p3) target bundleno = 3 (0x3), region = 94 }
 0x24b   :  { %470 = vsyncpa [#allocation3], 1 }
 0x24c   :  { %472 = vsyncpa [#allocation3 + $0x1], 1 }

// kernel: bert_review_classifier_forward.18
= control target key start
LH: loop header
LB: loop body
LE: loop exit
PB: predicated region body
PF: predicated region fallthrough
CT: control target
= control target key end

     0   :  { %s622_s24 = smov 0   ;;  %s677_s0 = inlined_call_operand.vmem [shape: bf16[16,64], index: 0, kind: input, shape index: {}]   ;;  %s678_s1 = inlined_call_operand.vmem [shape: bf16[64,32], index: 1, kind: input, shape index: {}]   ;;  %s679_s2 = inlined_call_operand.vmem [shape: f32[1,32], index: 2, kind: input, shape index: {}]   ;;  %s680_s3 = inlined_call_operand.vmem [shape: f32[16,32], index: 3, kind: input, shape index: {}]   ;;  %s681_s4 = inlined_call_operand.vmem [shape: f32[1,32], index: 4, kind: input, shape index: {}]   ;;  %s682_s5 = inlined_call_operand.vmem [shape: f32[1,32], index: 5, kind: input, shape index: {}]   ;;  %s683_s6 = inlined_call_operand.vmem [shape: f32[16,32], index: 6, kind: output, shape index: {0}]   ;;  %s684_s7 = inlined_call_operand.vmem [shape: bf16[16,32], index: 7, kind: output, shape index: {1}]  }
   0x1 LB: > { %s520_s25 = sadd.s32 4294967295, %s578_s24   ;;  %p524_p0 = scmp.ge.s32.totalorder %s578_s24, 1  ;;  %s578_s24 = sphi %s622_s24, %s18_s24  }
   0x2   : > { %p248_p1 = scmp.lt.s32.totalorder %s578_s24, 3 }
   0x4   : > { %p249_p2 = pnand %p524_p0, %p248_p1 }
   0x5   : > { %v566_v0 = vld [vmem:[%s678_s1] sm:$0xff] (!%p249_p2)   ;;  %v580_v1 = vmov (!%p249_p2), 0.0   ;;  %v567_v2 = vld [vmem:[%s678_s1 + $0x8] sm:$0xff] (!%p249_p2)   ;;  %vm581_vm0 = vmmov (!%p249_p2), 0   ;;  %p286_p3 = scmp.lt.s32.totalorder (!%p249_p2), %s520_s25, 1  ;;  %v568_v3 = vld [vmem:[%s678_s1 + $0x10] sm:$0xff] (!%p249_p2)  }
   0x6   : > { %252 = sbr.rel (%p249_p2) target bundleno = 554 (0x22a), region = 44  ;;  %544 = vmatprep.subr.bf16.mxu0 (!%p249_p2), %v580_v1  ;;  %552 = vmatprep.mubr.msk.bf16.mxu0 (!%p249_p2), %vm581_vm0, %v580_v1  ;;  %v569_v4 = vld [vmem:[%s678_s1 + $0x18] sm:$0xff] (!%p249_p2)   ;;  %vm343_vm1 = vcmask (!%p249_p2), 523264   ;;  %v529_v6 = vld [vmem:[%s679_s2] ss:$0 sm:$0xff] (!%p249_p2)  ;;  %vm391_vm2 = vcmask (!%p249_p2), 261120  }
   0x7   : > { %545 = vmatpush3.bf16.msra.mxu0 (!%p249_p2), %v566_v0  ;;  %v535_v24 = vld [vmem:[%s681_s4] ss:$0 sm:$0xff] (!%p249_p2)  ;;  %vm422_vm3 = vcmask (!%p249_p2), 257024  }
   0x8   : > { %546 = vmatprep.subr.bf16.mxu0 (!%p249_p2), %v580_v1  ;;  %v536_v26 = vld [vmem:[%s682_s5] ss:$0 sm:$0xff] (!%p249_p2) }
   0xb   : > { %547 = vmatpush3.bf16.msra.mxu0 (!%p249_p2), %v567_v2 }
   0xc   : > { %548 = vmatprep.subr.bf16.mxu0 (!%p249_p2), %v580_v1 }
   0xd   : > { %s686_s25 = smov (!%p286_p3, %s520_s25), 1 }
   0xe   : > { %s525_s9 = sshll.u32 %s686_s25, 2  ;;  %s526_s15 = sshll.u32 %s686_s25, 3 }
   0xf   : > { %549 = vmatpush3.bf16.msra.mxu0 %v568_v3  ;;  %s289_s14 = scalar_lea.vmem %s677_s0, %s525_s9  ;;  %s293_s18 = scalar_lea.vmem %s680_s3, %s526_s15 }
  0x10   : > { %550 = vmatprep.subr.bf16.mxu0 %v580_v1  ;;  %v303_v5 = vld [vmem:[%s289_s14] sm:$0xf]  ;;  %s297_s29 = scalar_lea.vmem %s683_s6, %s526_s15  ;;  %s301_s10 = scalar_lea.vmem %s684_s7, %s525_s9 }
  0x11   : > { %v387_v8 = vld [vmem:[%s293_s18] sm:$0xff] }
  0x13   : > { %551 = vmatpush3.bf16.msra.mxu0 %v569_v4 }
  0x16   : > { %553 = vmatmul.mubr.msk.bf16.vlgmr.msra.gmra.mrb[0].mxu0 %vm343_vm1, %v303_v5 }
  0xe9   : > { %v381_v7 = vpop.f32.mrb[0].mxu0 }
  0xea   : > { %v382_v9 = vadd.f32 %v529_v6, %v381_v7  ;;  %v554_v10 = vpop.f32.mrb[1].mxu0 }
  0xeb   : > { %v384_v11 = vpop.f32.mrb[2].mxu0 }
  0xec   : > { %v555_v12 = vpop.f32.mrb[3].mxu0  ;;  %v388_v13 = vadd.f32 %v387_v8, %v382_v9 }
  0xee   : > { %v392_v14 = vsel %vm391_vm2, %v388_v13, 0.0 }
  0xef   : > { %393 = vadd.xlane.f32.xlu0 %v392_v14 }
 0x17c   : > { %v394_v15 = vpop.xlane.xlu0 %393 }
 0x17d   : > { %v396_v16 = vmul.f32 0.03125, %v394_v15 }
 0x17f   : > { %v397_v17 = vsub.f32 %v388_v13, %v396_v16 }
 0x181   : > { %v398_v18 = vmul.f32 %v397_v17, %v397_v17 }
 0x183   : > { %v399_v19 = vsel %vm391_vm2, %v398_v18, 0.0 }
 0x184   : > { %400 = vadd.xlane.f32.xlu0 %v399_v19 }
 0x211   : > { %v401_v20 = vpop.xlane.xlu0 %400 }
 0x212   : > { %v402_v21 = vmul.f32 0.03125, %v401_v20 }
 0x214   : > { %v403_v22 = vadd.f32 1e-12, %v402_v21 }
 0x216   : > { %570 = vrsqrt.f32 %v403_v22 }
 0x220   : > { %v571_v23 = vpop.eup %570 }
 0x221   : > { %v405_v25 = vmul.f32 %v571_v23, %v397_v17 }
 0x223   : > { %v412_v27 = vmul.f32 %v535_v24, %v405_v25 }
 0x225   : > { %v419_v28 = vadd.f32 %v536_v26, %v412_v27 }
 0x227   : > { %420 = vst.msk [vmem:[%s297_s29] sm:$0xff] %vm391_vm2, %v419_v28  ;;  %v421_v29 = vpack.c.bf16 %v419_v28, %v419_v28 }
 0x229   : > { %423 = vst.msk [vmem:[%s301_s10] sm:$0xf] %vm422_vm3, %v421_v29 }
 0x22a PF: > { %s18_s24 = sadd.s32 1, %s578_s24  }
 0x22b   : > { %p15_p4 = scmp.ge.s32.totalorder %s18_s24, 4  }
 0x22d   :  { %17 = sbr.rel (!%p15_p4) target bundleno = 1 (0x1), region = 89 }

// kernel: bert_review_classifier_forward.25
= control target key start
LH: loop header
LB: loop body
LE: loop exit
PB: predicated region body
PF: predicated region fallthrough
CT: control target
= control target key end

     0   :  { %v389_v3 = vmov 0.0|0.0   ;;  %vm390_vm0 = vmmov 0   ;;  %v391_v6 = vmov 0.0   ;;  %s490_s0 = inlined_call_operand.vmem [shape: f32[2,32], index: 0, kind: input, shape index: {}]   ;;  %s491_s1 = inlined_call_operand.vmem [shape: f32[32,32], index: 1, kind: input, shape index: {}]   ;;  %s492_s2 = inlined_call_operand.vmem [shape: f32[1,32], index: 2, kind: input, shape index: {}]   ;;  %s493_s3 = inlined_call_operand.vmem [shape: f32[32,16], index: 3, kind: input, shape index: {}]   ;;  %s494_s4 = inlined_call_operand.vmem [shape: f32[1,16], index: 4, kind: input, shape index: {}]   ;;  %s495_s5 = inlined_call_operand.vmem [shape: f32[16,3], index: 5, kind: input, shape index: {}]   ;;  %s496_s6 = inlined_call_operand.vmem [shape: f32[1,3], index: 6, kind: input, shape index: {}]   ;;  %s497_s7 = inlined_call_operand.hbm [shape: f32[2,3], index: 7, kind: output, shape index: {}]  }
   0x1   :  { %v28_v0 = vld [vmem:[%s491_s1] sm:$0xff]  ;;  %v29_v1 = vld [vmem:[%s491_s1 + $0x8] sm:$0xff]  ;;  %v30_v2 = vld [vmem:[%s491_s1 + $0x10] sm:$0xff]  ;;  %346 = vmatprep.subr.bf16.mxu0 %v389_v3  ;;  %325 = vmatprep.mubr.msk.f32.mxu0 %vm390_vm0, %v391_v6 }
   0x2   :  { %v347_v4 = vpack.c.bf16 %v29_v1, %v28_v0  ;;  %v31_v5 = vld [vmem:[%s491_s1 + $0x18] sm:$0xff]  ;;  %v114_v7 = vld [vmem:[%s493_s3] sm:$0xff]  ;;  %352 = vmatprep.subr.bf16.mxu1 %v389_v3  ;;  %v115_v8 = vld [vmem:[%s493_s3 + $0x8] sm:$0xff]  ;;  %336 = vmatprep.mubr.msk.f32.mxu1 %vm390_vm0, %v391_v6 }
   0x3   :  { %12 = vsyncpa [#allocation3], 0  ;;  %v350_v9 = vpack.c.bf16 %v31_v5, %v30_v2  ;;  %v353_v10 = vpack.c.bf16 %v115_v8, %v114_v7  ;;  %v27_v11 = vld [vmem:[%s490_s0] sm:$0x3]  ;;  %vm39_vm1 = vcmask 261120   ;;  %v116_v12 = vld [vmem:[%s493_s3 + $0x10] sm:$0xff] }
   0x4   :  { %348 = vmatpush3.bf16.msra.mxu0 %v347_v4  ;;  %v117_v13 = vld [vmem:[%s493_s3 + $0x18] sm:$0xff]  ;;  %v298_v15 = vld [vmem:[%s492_s2] ss:$0 sm:$0xff]  ;;  %v200_v21 = vld [vmem:[%s495_s5 + $0x8] sm:$0xff]  ;;  %vm208_vm2 = vcmask 130048   ;;  %s392_s25 = smov [#allocation2]  }
   0x5   :  { %349 = vmatprep.subr.bf16.mxu0 %v389_v3  ;;  %354 = vmatpush3.bf16.msra.mxu1 %v353_v10  ;;  %v356_v14 = vpack.c.bf16 %v117_v13, %v116_v12  ;;  %v199_v20 = vld [vmem:[%s495_s5] sm:$0xff]  ;;  %s290_s26 = sshll.u32 %s392_s25, 4  ;;  %vm282_vm3 = vcmask 17408   ;;  %s291_s26 = int_to_ptr.vmem [resolvable:$true] %s290_s26 }
   0x6   :  { %355 = vmatprep.subr.bf16.mxu1 %v389_v3  ;;  %v359_v22 = vpack.c.bf16 %v200_v21, %v199_v20  ;;  %v300_v23 = vld [vmem:[%s494_s4] ss:$0 sm:$0xff]  ;;  %s365_s5 = scalar_lea.vmem %s291_s26, 32  ;;  %p370_p1 = scmp.lt.s32.totalorder %s291_s26, %s291_s26 }
   0x7   :  { %v302_v28 = vld [vmem:[%s496_s6] ss:$0 sm:$0xff]  ;;  %p366_p0 = scmp.ne.s32.totalorder %s291_s26, %s365_s5  ;;  %p371_p2 = scmp.lt.s32.totalorder %s365_s5, %s365_s5 }
   0x8   :  { %351 = vmatpush3.bf16.msra.mxu0 %v350_v9 }
   0x9   :  { %358 = vmatprep.subr.bf16.mxu0 %v389_v3  ;;  %357 = vmatpush3.bf16.msra.mxu1 %v356_v14  ;;  %p372_p3 = por %p371_p2, %p370_p1 }
   0xb   :  { %326 = vmatmul.mubr.msk.f32.vlgmr.msra.gmra.mrb[0].mxu0 %vm39_vm1, %v27_v11  ;;  %p373_p4 = pnand %p372_p3, %p366_p0 }
   0xc   :  { %343 = vmatprep.mubr.msk.f32.mxu0 %vm390_vm0, %v391_v6  ;;  %360 = vmatpush3.bf16.msra.mxu0 %v359_v22 }
  0xde   :  { %v109_v16 = vpop.f32.mrb[0].mxu0 }
  0xdf   :  { %v110_v17 = vadd.f32 %v298_v15, %v109_v16  ;;  %v327_v18 = vpop.f32.mrb[1].mxu0 }
  0xe1   :  { %v113_v19 = vmax.f32 %v110_v17, 0.0 }
  0xe3   :  { %337 = vmatmul.mubr.msk.f32.vlgmr.msra.gmra.mrb[0].mxu1 %vm39_vm1, %v113_v19 }
 0x1b6   :  { %v194_v24 = vpop.f32.mrb[0].mxu1 }
 0x1b7   :  { %v195_v25 = vadd.f32 %v300_v23, %v194_v24  ;;  %v338_v26 = vpop.f32.mrb[1].mxu1 }
 0x1b9   :  { %v198_v27 = vmax.f32 %v195_v25, 0.0 }
 0x1bb   :  { %344 = vmatmul.mubr.msk.f32.vlgmr.msra.gmra.mrb[2].mxu0 %vm208_vm2, %v198_v27 }
 0x28e   :  { %v278_v29 = vpop.f32.mrb[2].mxu0 }
 0x28f   :  { %v279_v30 = vadd.f32 %v302_v28, %v278_v29  ;;  %v345_v31 = vpop.f32.mrb[3].mxu0 }
 0x291   :  { %283 = vst.msk [vmem:[#allocation2] sm:$0x3] %vm282_vm3, %v279_v30 }
 0x292   :  { %376 = shalt.err (!%p373_p4)
}
 0x293   :  { %s377_s28 = scalar_lea.hbm %s497_s7, 32 }
 0x294   :  { %p378_p5 = scmp.ne.s32.totalorder %s497_s7, %s377_s28  ;;  %p381_p6 = scmp.lt.u32.totalorder %s377_s28, %s497_s7 }
 0x296   :  { %p383_p7 = pnand %p381_p6, %p378_p5 }
 0x298   :  { %386 = shalt.err (!%p383_p7)
}
 0x299   :  { %293 = dma.vmem_to_hbm [thread:$0]  %s291_s26, 32, %s497_s7, [#allocation3]  }
 0x29a   :  { %387 = dma.done.wait [#allocation3], 32  }
 0x29b   :  { %388 = vsyncadd [#allocation3], 4294967264 }
 0x29c   :  { %297 = vsyncpa [#allocation3], 1 }

</bundles_post_ra>
